<compile_context>
chip_gen: v6e
topology: v6e:2x2x1
jax: 0.10.0
libtpu: 0.0.40
codegen_flags: <defaults>
</compile_context>

<pallas_src>
import jax
import jax.numpy as jnp
from jax.experimental import pallas as pl
from jax.experimental.pallas import tpu as pltpu


def mlp_kernel(x_ref, w1_ref, b1_ref, w2_ref, b2_ref, o_ref):
    """Full TorchNet forward for one (BR, L) lane-dense batch tile.

    x_ref, o_ref : (BR, L) f32 VMEM tiles — every element is one sample.
    w1_ref, b1_ref, w2_ref : (m,) f32 in SMEM (Linear(1,m) / Linear(m,1) params).
    b2_ref : (1,) f32 in SMEM.
    """
    x = x_ref[...]                                   # (BR, L)
    m = w1_ref.shape[0]
    acc = jnp.zeros_like(x)                          # layer-2 pre-activation accumulator
    # K=1 / N=1 contractions -> pure VPU + EUP work with SMEM scalar weights (no MXU).
    for j in range(m):                               # m is small & static -> fully unrolled
        h_j = jax.nn.sigmoid(x * w1_ref[j] + b1_ref[j])   # hidden unit j for all samples
        acc = acc + h_j * w2_ref[j]
    o_ref[...] = jax.nn.sigmoid(acc + b2_ref[0]).astype(o_ref.dtype)


def torchnet_forward(x, w1, b1, w2, b2, *, lane_width=512, block_rows=8):
    """x: (N, 1) f32; w1, b1, w2: (m,) f32; b2: (1,) f32 -> (N, 1) f32."""
    n = x.shape[0]
    L = lane_width                                   # multiple of 128 (lane axis)
    BR = block_rows                                  # multiple of 8 (sublane axis)

    # Pad the batch so it tiles exactly into (BR, L) lane-dense blocks.
    rows = (n + L - 1) // L
    rows_padded = ((rows + BR - 1) // BR) * BR
    total = rows_padded * L
    x2d = jnp.pad(x.reshape(-1), (0, total - n)).reshape(rows_padded, L)

    grid = (rows_padded // BR,)

    out2d = pl.pallas_call(
        mlp_kernel,
        out_shape=jax.ShapeDtypeStruct((rows_padded, L), x.dtype),
        grid_spec=pltpu.PrefetchScalarGridSpec(
            num_scalar_prefetch=0,
            grid=grid,
            in_specs=[
                pl.BlockSpec((BR, L), lambda i: (i, 0)),                 # x tile (lane-dense)
                pl.BlockSpec(memory_space=pltpu.MemorySpace.SMEM),       # w1 (m,)
                pl.BlockSpec(memory_space=pltpu.MemorySpace.SMEM),       # b1 (m,)
                pl.BlockSpec(memory_space=pltpu.MemorySpace.SMEM),       # w2 (m,)
                pl.BlockSpec(memory_space=pltpu.MemorySpace.SMEM),       # b2 (1,)
            ],
            out_specs=pl.BlockSpec((BR, L), lambda i: (i, 0)),           # lane-dense output
        ),
        compiler_params=pltpu.CompilerParams(
            dimension_semantics=("parallel",),       # batch tiles shard across TCs (v7x)
        ),
    )(x2d, w1, b1, w2, b2)

    return out2d.reshape(-1)[:n].reshape(n, 1)


def reference_forward(x, w1, b1, w2, b2):
    h = jax.nn.sigmoid(x * w1[None, :] + b1[None, :])      # (N, m)   (in_features == 1)
    return jax.nn.sigmoid(h @ w2[:, None] + b2[None, :])   # (N, 1)


if __name__ == "__main__":
    m = 32          # hidden width of TorchNet(m)
    batch = 5000    # deliberately not a multiple of the tile -> exercises pad/trim path

    key = jax.random.PRNGKey(0)
    kx, kw1, kb1, kw2, kb2 = jax.random.split(key, 5)

    # Same shapes/init bounds as nn.Linear(1, m) / nn.Linear(m, 1), stored flat.
    bound1 = 1.0                   # fan_in = 1 for Linear(1, m)
    bound2 = 1.0 / jnp.sqrt(m)     # fan_in = m for Linear(m, 1)
    w1 = jax.random.uniform(kw1, (m,), jnp.float32, -bound1, bound1)
    b1 = jax.random.uniform(kb1, (m,), jnp.float32, -bound1, bound1)
    w2 = jax.random.uniform(kw2, (m,), jnp.float32, -bound2, bound2)
    b2 = jax.random.uniform(kb2, (1,), jnp.float32, -bound2, bound2)

    x = jax.random.normal(kx, (batch, 1), jnp.float32)

    out = torchnet_forward(x, w1, b1, w2, b2)
    out = jax.block_until_ready(out)

    ref = reference_forward(x, w1, b1, w2, b2)
    assert out.shape == (batch, 1)
    assert jnp.allclose(out, ref, atol=1e-5, rtol=1e-5), "mismatch vs. JAX reference"

    print("KERNEL_OK")
</pallas_src>

<mosaic_0001>
module attributes {stable_mosaic.version = 11 : i64} {
  func.func @mlp_kernel(%arg0: i32, %arg1: memref<8x512xf32, #tpu.memory_space<vmem>>, %arg2: memref<32xf32, #tpu.memory_space<smem>>, %arg3: memref<32xf32, #tpu.memory_space<smem>>, %arg4: memref<32xf32, #tpu.memory_space<smem>>, %arg5: memref<1xf32, #tpu.memory_space<smem>>, %arg6: memref<8x512xf32, #tpu.memory_space<vmem>>) attributes {dimension_semantics = [#tpu.dimension_semantics<parallel>], iteration_bounds = array<i64: 2>, scalar_prefetch = 0 : i64, scratch_operands = 0 : i64, tpu.core_type = #tpu.core_type<tc>, window_params = [{transform_indices = @transform_0, window_bounds = array<i64: 8, 512>}, {transform_indices = @transform_1, window_bounds = array<i64: 32>}, {transform_indices = @transform_2, window_bounds = array<i64: 32>}, {transform_indices = @transform_3, window_bounds = array<i64: 32>}, {transform_indices = @transform_4, window_bounds = array<i64: 1>}, {transform_indices = @transform_5, window_bounds = array<i64: 8, 512>}]} {
    %c0 = arith.constant 0 : index
    %c0_0 = arith.constant 0 : index
    %0 = vector.load %arg1[%c0, %c0_0] : memref<8x512xf32, #tpu.memory_space<vmem>>, vector<8x512xf32>
    %cst = arith.constant 0.000000e+00 : f32
    %1 = vector.broadcast %cst : f32 to vector<8x512xf32>
    %c0_1 = arith.constant 0 : index
    %2 = memref.load %arg2[%c0_1] : memref<32xf32, #tpu.memory_space<smem>>
    %3 = vector.broadcast %2 : f32 to vector<8x512xf32>
    %4 = arith.mulf %0, %3 : vector<8x512xf32>
    %c0_2 = arith.constant 0 : index
    %5 = memref.load %arg3[%c0_2] : memref<32xf32, #tpu.memory_space<smem>>
    %6 = vector.broadcast %5 : f32 to vector<8x512xf32>
    %7 = arith.addf %4, %6 : vector<8x512xf32>
    %8 = arith.negf %7 : vector<8x512xf32>
    %9 = math.exp %8 : vector<8x512xf32>
    %cst_3 = arith.constant 1.000000e+00 : f32
    %10 = vector.broadcast %cst_3 : f32 to vector<8x512xf32>
    %11 = arith.addf %10, %9 : vector<8x512xf32>
    %12 = arith.divf %10, %11 : vector<8x512xf32>
    %c0_4 = arith.constant 0 : index
    %13 = memref.load %arg4[%c0_4] : memref<32xf32, #tpu.memory_space<smem>>
    %14 = vector.broadcast %13 : f32 to vector<8x512xf32>
    %15 = arith.mulf %12, %14 : vector<8x512xf32>
    %16 = arith.addf %1, %15 : vector<8x512xf32>
    %c1 = arith.constant 1 : index
    %17 = memref.load %arg2[%c1] : memref<32xf32, #tpu.memory_space<smem>>
    %18 = vector.broadcast %17 : f32 to vector<8x512xf32>
    %19 = arith.mulf %0, %18 : vector<8x512xf32>
    %c1_5 = arith.constant 1 : index
    %20 = memref.load %arg3[%c1_5] : memref<32xf32, #tpu.memory_space<smem>>
    %21 = vector.broadcast %20 : f32 to vector<8x512xf32>
    %22 = arith.addf %19, %21 : vector<8x512xf32>
    %23 = arith.negf %22 : vector<8x512xf32>
    %24 = math.exp %23 : vector<8x512xf32>
    %cst_6 = arith.constant 1.000000e+00 : f32
    %25 = vector.broadcast %cst_6 : f32 to vector<8x512xf32>
    %26 = arith.addf %25, %24 : vector<8x512xf32>
    %27 = arith.divf %25, %26 : vector<8x512xf32>
    %c1_7 = arith.constant 1 : index
    %28 = memref.load %arg4[%c1_7] : memref<32xf32, #tpu.memory_space<smem>>
    %29 = vector.broadcast %28 : f32 to vector<8x512xf32>
    %30 = arith.mulf %27, %29 : vector<8x512xf32>
    %31 = arith.addf %16, %30 : vector<8x512xf32>
    %c2 = arith.constant 2 : index
    %32 = memref.load %arg2[%c2] : memref<32xf32, #tpu.memory_space<smem>>
    %33 = vector.broadcast %32 : f32 to vector<8x512xf32>
    %34 = arith.mulf %0, %33 : vector<8x512xf32>
    %c2_8 = arith.constant 2 : index
    %35 = memref.load %arg3[%c2_8] : memref<32xf32, #tpu.memory_space<smem>>
    %36 = vector.broadcast %35 : f32 to vector<8x512xf32>
    %37 = arith.addf %34, %36 : vector<8x512xf32>
    %38 = arith.negf %37 : vector<8x512xf32>
    %39 = math.exp %38 : vector<8x512xf32>
    %cst_9 = arith.constant 1.000000e+00 : f32
    %40 = vector.broadcast %cst_9 : f32 to vector<8x512xf32>
    %41 = arith.addf %40, %39 : vector<8x512xf32>
    %42 = arith.divf %40, %41 : vector<8x512xf32>
    %c2_10 = arith.constant 2 : index
    %43 = memref.load %arg4[%c2_10] : memref<32xf32, #tpu.memory_space<smem>>
    %44 = vector.broadcast %43 : f32 to vector<8x512xf32>
    %45 = arith.mulf %42, %44 : vector<8x512xf32>
    %46 = arith.addf %31, %45 : vector<8x512xf32>
    %c3 = arith.constant 3 : index
    %47 = memref.load %arg2[%c3] : memref<32xf32, #tpu.memory_space<smem>>
    %48 = vector.broadcast %47 : f32 to vector<8x512xf32>
    %49 = arith.mulf %0, %48 : vector<8x512xf32>
    %c3_11 = arith.constant 3 : index
    %50 = memref.load %arg3[%c3_11] : memref<32xf32, #tpu.memory_space<smem>>
    %51 = vector.broadcast %50 : f32 to vector<8x512xf32>
    %52 = arith.addf %49, %51 : vector<8x512xf32>
    %53 = arith.negf %52 : vector<8x512xf32>
    %54 = math.exp %53 : vector<8x512xf32>
    %cst_12 = arith.constant 1.000000e+00 : f32
    %55 = vector.broadcast %cst_12 : f32 to vector<8x512xf32>
    %56 = arith.addf %55, %54 : vector<8x512xf32>
    %57 = arith.divf %55, %56 : vector<8x512xf32>
    %c3_13 = arith.constant 3 : index
    %58 = memref.load %arg4[%c3_13] : memref<32xf32, #tpu.memory_space<smem>>
    %59 = vector.broadcast %58 : f32 to vector<8x512xf32>
    %60 = arith.mulf %57, %59 : vector<8x512xf32>
    %61 = arith.addf %46, %60 : vector<8x512xf32>
    %c4 = arith.constant 4 : index
    %62 = memref.load %arg2[%c4] : memref<32xf32, #tpu.memory_space<smem>>
    %63 = vector.broadcast %62 : f32 to vector<8x512xf32>
    %64 = arith.mulf %0, %63 : vector<8x512xf32>
    %c4_14 = arith.constant 4 : index
    %65 = memref.load %arg3[%c4_14] : memref<32xf32, #tpu.memory_space<smem>>
    %66 = vector.broadcast %65 : f32 to vector<8x512xf32>
    %67 = arith.addf %64, %66 : vector<8x512xf32>
    %68 = arith.negf %67 : vector<8x512xf32>
    %69 = math.exp %68 : vector<8x512xf32>
    %cst_15 = arith.constant 1.000000e+00 : f32
    %70 = vector.broadcast %cst_15 : f32 to vector<8x512xf32>
    %71 = arith.addf %70, %69 : vector<8x512xf32>
    %72 = arith.divf %70, %71 : vector<8x512xf32>
    %c4_16 = arith.constant 4 : index
    %73 = memref.load %arg4[%c4_16] : memref<32xf32, #tpu.memory_space<smem>>
    %74 = vector.broadcast %73 : f32 to vector<8x512xf32>
    %75 = arith.mulf %72, %74 : vector<8x512xf32>
    %76 = arith.addf %61, %75 : vector<8x512xf32>
    %c5 = arith.constant 5 : index
    %77 = memref.load %arg2[%c5] : memref<32xf32, #tpu.memory_space<smem>>
    %78 = vector.broadcast %77 : f32 to vector<8x512xf32>
    %79 = arith.mulf %0, %78 : vector<8x512xf32>
    %c5_17 = arith.constant 5 : index
    %80 = memref.load %arg3[%c5_17] : memref<32xf32, #tpu.memory_space<smem>>
    %81 = vector.broadcast %80 : f32 to vector<8x512xf32>
    %82 = arith.addf %79, %81 : vector<8x512xf32>
    %83 = arith.negf %82 : vector<8x512xf32>
    %84 = math.exp %83 : vector<8x512xf32>
    %cst_18 = arith.constant 1.000000e+00 : f32
    %85 = vector.broadcast %cst_18 : f32 to vector<8x512xf32>
    %86 = arith.addf %85, %84 : vector<8x512xf32>
    %87 = arith.divf %85, %86 : vector<8x512xf32>
    %c5_19 = arith.constant 5 : index
    %88 = memref.load %arg4[%c5_19] : memref<32xf32, #tpu.memory_space<smem>>
    %89 = vector.broadcast %88 : f32 to vector<8x512xf32>
    %90 = arith.mulf %87, %89 : vector<8x512xf32>
    %91 = arith.addf %76, %90 : vector<8x512xf32>
    %c6 = arith.constant 6 : index
    %92 = memref.load %arg2[%c6] : memref<32xf32, #tpu.memory_space<smem>>
    %93 = vector.broadcast %92 : f32 to vector<8x512xf32>
    %94 = arith.mulf %0, %93 : vector<8x512xf32>
    %c6_20 = arith.constant 6 : index
    %95 = memref.load %arg3[%c6_20] : memref<32xf32, #tpu.memory_space<smem>>
    %96 = vector.broadcast %95 : f32 to vector<8x512xf32>
    %97 = arith.addf %94, %96 : vector<8x512xf32>
    %98 = arith.negf %97 : vector<8x512xf32>
    %99 = math.exp %98 : vector<8x512xf32>
    %cst_21 = arith.constant 1.000000e+00 : f32
    %100 = vector.broadcast %cst_21 : f32 to vector<8x512xf32>
    %101 = arith.addf %100, %99 : vector<8x512xf32>
    %102 = arith.divf %100, %101 : vector<8x512xf32>
    %c6_22 = arith.constant 6 : index
    %103 = memref.load %arg4[%c6_22] : memref<32xf32, #tpu.memory_space<smem>>
    %104 = vector.broadcast %103 : f32 to vector<8x512xf32>
    %105 = arith.mulf %102, %104 : vector<8x512xf32>
    %106 = arith.addf %91, %105 : vector<8x512xf32>
    %c7 = arith.constant 7 : index
    %107 = memref.load %arg2[%c7] : memref<32xf32, #tpu.memory_space<smem>>
    %108 = vector.broadcast %107 : f32 to vector<8x512xf32>
    %109 = arith.mulf %0, %108 : vector<8x512xf32>
    %c7_23 = arith.constant 7 : index
    %110 = memref.load %arg3[%c7_23] : memref<32xf32, #tpu.memory_space<smem>>
    %111 = vector.broadcast %110 : f32 to vector<8x512xf32>
    %112 = arith.addf %109, %111 : vector<8x512xf32>
    %113 = arith.negf %112 : vector<8x512xf32>
    %114 = math.exp %113 : vector<8x512xf32>
    %cst_24 = arith.constant 1.000000e+00 : f32
    %115 = vector.broadcast %cst_24 : f32 to vector<8x512xf32>
    %116 = arith.addf %115, %114 : vector<8x512xf32>
    %117 = arith.divf %115, %116 : vector<8x512xf32>
    %c7_25 = arith.constant 7 : index
    %118 = memref.load %arg4[%c7_25] : memref<32xf32, #tpu.memory_space<smem>>
    %119 = vector.broadcast %118 : f32 to vector<8x512xf32>
    %120 = arith.mulf %117, %119 : vector<8x512xf32>
    %121 = arith.addf %106, %120 : vector<8x512xf32>
    %c8 = arith.constant 8 : index
    %122 = memref.load %arg2[%c8] : memref<32xf32, #tpu.memory_space<smem>>
    %123 = vector.broadcast %122 : f32 to vector<8x512xf32>
    %124 = arith.mulf %0, %123 : vector<8x512xf32>
    %c8_26 = arith.constant 8 : index
    %125 = memref.load %arg3[%c8_26] : memref<32xf32, #tpu.memory_space<smem>>
    %126 = vector.broadcast %125 : f32 to vector<8x512xf32>
    %127 = arith.addf %124, %126 : vector<8x512xf32>
    %128 = arith.negf %127 : vector<8x512xf32>
    %129 = math.exp %128 : vector<8x512xf32>
    %cst_27 = arith.constant 1.000000e+00 : f32
    %130 = vector.broadcast %cst_27 : f32 to vector<8x512xf32>
    %131 = arith.addf %130, %129 : vector<8x512xf32>
    %132 = arith.divf %130, %131 : vector<8x512xf32>
    %c8_28 = arith.constant 8 : index
    %133 = memref.load %arg4[%c8_28] : memref<32xf32, #tpu.memory_space<smem>>
    %134 = vector.broadcast %133 : f32 to vector<8x512xf32>
    %135 = arith.mulf %132, %134 : vector<8x512xf32>
    %136 = arith.addf %121, %135 : vector<8x512xf32>
    %c9 = arith.constant 9 : index
    %137 = memref.load %arg2[%c9] : memref<32xf32, #tpu.memory_space<smem>>
    %138 = vector.broadcast %137 : f32 to vector<8x512xf32>
    %139 = arith.mulf %0, %138 : vector<8x512xf32>
    %c9_29 = arith.constant 9 : index
    %140 = memref.load %arg3[%c9_29] : memref<32xf32, #tpu.memory_space<smem>>
    %141 = vector.broadcast %140 : f32 to vector<8x512xf32>
    %142 = arith.addf %139, %141 : vector<8x512xf32>
    %143 = arith.negf %142 : vector<8x512xf32>
    %144 = math.exp %143 : vector<8x512xf32>
    %cst_30 = arith.constant 1.000000e+00 : f32
    %145 = vector.broadcast %cst_30 : f32 to vector<8x512xf32>
    %146 = arith.addf %145, %144 : vector<8x512xf32>
    %147 = arith.divf %145, %146 : vector<8x512xf32>
    %c9_31 = arith.constant 9 : index
    %148 = memref.load %arg4[%c9_31] : memref<32xf32, #tpu.memory_space<smem>>
    %149 = vector.broadcast %148 : f32 to vector<8x512xf32>
    %150 = arith.mulf %147, %149 : vector<8x512xf32>
    %151 = arith.addf %136, %150 : vector<8x512xf32>
    %c10 = arith.constant 10 : index
    %152 = memref.load %arg2[%c10] : memref<32xf32, #tpu.memory_space<smem>>
    %153 = vector.broadcast %152 : f32 to vector<8x512xf32>
    %154 = arith.mulf %0, %153 : vector<8x512xf32>
    %c10_32 = arith.constant 10 : index
    %155 = memref.load %arg3[%c10_32] : memref<32xf32, #tpu.memory_space<smem>>
    %156 = vector.broadcast %155 : f32 to vector<8x512xf32>
    %157 = arith.addf %154, %156 : vector<8x512xf32>
    %158 = arith.negf %157 : vector<8x512xf32>
    %159 = math.exp %158 : vector<8x512xf32>
    %cst_33 = arith.constant 1.000000e+00 : f32
    %160 = vector.broadcast %cst_33 : f32 to vector<8x512xf32>
    %161 = arith.addf %160, %159 : vector<8x512xf32>
    %162 = arith.divf %160, %161 : vector<8x512xf32>
    %c10_34 = arith.constant 10 : index
    %163 = memref.load %arg4[%c10_34] : memref<32xf32, #tpu.memory_space<smem>>
    %164 = vector.broadcast %163 : f32 to vector<8x512xf32>
    %165 = arith.mulf %162, %164 : vector<8x512xf32>
    %166 = arith.addf %151, %165 : vector<8x512xf32>
    %c11 = arith.constant 11 : index
    %167 = memref.load %arg2[%c11] : memref<32xf32, #tpu.memory_space<smem>>
    %168 = vector.broadcast %167 : f32 to vector<8x512xf32>
    %169 = arith.mulf %0, %168 : vector<8x512xf32>
    %c11_35 = arith.constant 11 : index
    %170 = memref.load %arg3[%c11_35] : memref<32xf32, #tpu.memory_space<smem>>
    %171 = vector.broadcast %170 : f32 to vector<8x512xf32>
    %172 = arith.addf %169, %171 : vector<8x512xf32>
    %173 = arith.negf %172 : vector<8x512xf32>
    %174 = math.exp %173 : vector<8x512xf32>
    %cst_36 = arith.constant 1.000000e+00 : f32
    %175 = vector.broadcast %cst_36 : f32 to vector<8x512xf32>
    %176 = arith.addf %175, %174 : vector<8x512xf32>
    %177 = arith.divf %175, %176 : vector<8x512xf32>
    %c11_37 = arith.constant 11 : index
    %178 = memref.load %arg4[%c11_37] : memref<32xf32, #tpu.memory_space<smem>>
    %179 = vector.broadcast %178 : f32 to vector<8x512xf32>
    %180 = arith.mulf %177, %179 : vector<8x512xf32>
    %181 = arith.addf %166, %180 : vector<8x512xf32>
    %c12 = arith.constant 12 : index
    %182 = memref.load %arg2[%c12] : memref<32xf32, #tpu.memory_space<smem>>
    %183 = vector.broadcast %182 : f32 to vector<8x512xf32>
    %184 = arith.mulf %0, %183 : vector<8x512xf32>
    %c12_38 = arith.constant 12 : index
    %185 = memref.load %arg3[%c12_38] : memref<32xf32, #tpu.memory_space<smem>>
    %186 = vector.broadcast %185 : f32 to vector<8x512xf32>
    %187 = arith.addf %184, %186 : vector<8x512xf32>
    %188 = arith.negf %187 : vector<8x512xf32>
    %189 = math.exp %188 : vector<8x512xf32>
    %cst_39 = arith.constant 1.000000e+00 : f32
    %190 = vector.broadcast %cst_39 : f32 to vector<8x512xf32>
    %191 = arith.addf %190, %189 : vector<8x512xf32>
    %192 = arith.divf %190, %191 : vector<8x512xf32>
    %c12_40 = arith.constant 12 : index
    %193 = memref.load %arg4[%c12_40] : memref<32xf32, #tpu.memory_space<smem>>
    %194 = vector.broadcast %193 : f32 to vector<8x512xf32>
    %195 = arith.mulf %192, %194 : vector<8x512xf32>
    %196 = arith.addf %181, %195 : vector<8x512xf32>
    %c13 = arith.constant 13 : index
    %197 = memref.load %arg2[%c13] : memref<32xf32, #tpu.memory_space<smem>>
    %198 = vector.broadcast %197 : f32 to vector<8x512xf32>
    %199 = arith.mulf %0, %198 : vector<8x512xf32>
    %c13_41 = arith.constant 13 : index
    %200 = memref.load %arg3[%c13_41] : memref<32xf32, #tpu.memory_space<smem>>
    %201 = vector.broadcast %200 : f32 to vector<8x512xf32>
    %202 = arith.addf %199, %201 : vector<8x512xf32>
    %203 = arith.negf %202 : vector<8x512xf32>
    %204 = math.exp %203 : vector<8x512xf32>
    %cst_42 = arith.constant 1.000000e+00 : f32
    %205 = vector.broadcast %cst_42 : f32 to vector<8x512xf32>
    %206 = arith.addf %205, %204 : vector<8x512xf32>
    %207 = arith.divf %205, %206 : vector<8x512xf32>
    %c13_43 = arith.constant 13 : index
    %208 = memref.load %arg4[%c13_43] : memref<32xf32, #tpu.memory_space<smem>>
    %209 = vector.broadcast %208 : f32 to vector<8x512xf32>
    %210 = arith.mulf %207, %209 : vector<8x512xf32>
    %211 = arith.addf %196, %210 : vector<8x512xf32>
    %c14 = arith.constant 14 : index
    %212 = memref.load %arg2[%c14] : memref<32xf32, #tpu.memory_space<smem>>
    %213 = vector.broadcast %212 : f32 to vector<8x512xf32>
    %214 = arith.mulf %0, %213 : vector<8x512xf32>
    %c14_44 = arith.constant 14 : index
    %215 = memref.load %arg3[%c14_44] : memref<32xf32, #tpu.memory_space<smem>>
    %216 = vector.broadcast %215 : f32 to vector<8x512xf32>
    %217 = arith.addf %214, %216 : vector<8x512xf32>
    %218 = arith.negf %217 : vector<8x512xf32>
    %219 = math.exp %218 : vector<8x512xf32>
    %cst_45 = arith.constant 1.000000e+00 : f32
    %220 = vector.broadcast %cst_45 : f32 to vector<8x512xf32>
    %221 = arith.addf %220, %219 : vector<8x512xf32>
    %222 = arith.divf %220, %221 : vector<8x512xf32>
    %c14_46 = arith.constant 14 : index
    %223 = memref.load %arg4[%c14_46] : memref<32xf32, #tpu.memory_space<smem>>
    %224 = vector.broadcast %223 : f32 to vector<8x512xf32>
    %225 = arith.mulf %222, %224 : vector<8x512xf32>
    %226 = arith.addf %211, %225 : vector<8x512xf32>
    %c15 = arith.constant 15 : index
    %227 = memref.load %arg2[%c15] : memref<32xf32, #tpu.memory_space<smem>>
    %228 = vector.broadcast %227 : f32 to vector<8x512xf32>
    %229 = arith.mulf %0, %228 : vector<8x512xf32>
    %c15_47 = arith.constant 15 : index
    %230 = memref.load %arg3[%c15_47] : memref<32xf32, #tpu.memory_space<smem>>
    %231 = vector.broadcast %230 : f32 to vector<8x512xf32>
    %232 = arith.addf %229, %231 : vector<8x512xf32>
    %233 = arith.negf %232 : vector<8x512xf32>
    %234 = math.exp %233 : vector<8x512xf32>
    %cst_48 = arith.constant 1.000000e+00 : f32
    %235 = vector.broadcast %cst_48 : f32 to vector<8x512xf32>
    %236 = arith.addf %235, %234 : vector<8x512xf32>
    %237 = arith.divf %235, %236 : vector<8x512xf32>
    %c15_49 = arith.constant 15 : index
    %238 = memref.load %arg4[%c15_49] : memref<32xf32, #tpu.memory_space<smem>>
    %239 = vector.broadcast %238 : f32 to vector<8x512xf32>
    %240 = arith.mulf %237, %239 : vector<8x512xf32>
    %241 = arith.addf %226, %240 : vector<8x512xf32>
    %c16 = arith.constant 16 : index
    %242 = memref.load %arg2[%c16] : memref<32xf32, #tpu.memory_space<smem>>
    %243 = vector.broadcast %242 : f32 to vector<8x512xf32>
    %244 = arith.mulf %0, %243 : vector<8x512xf32>
    %c16_50 = arith.constant 16 : index
    %245 = memref.load %arg3[%c16_50] : memref<32xf32, #tpu.memory_space<smem>>
    %246 = vector.broadcast %245 : f32 to vector<8x512xf32>
    %247 = arith.addf %244, %246 : vector<8x512xf32>
    %248 = arith.negf %247 : vector<8x512xf32>
    %249 = math.exp %248 : vector<8x512xf32>
    %cst_51 = arith.constant 1.000000e+00 : f32
    %250 = vector.broadcast %cst_51 : f32 to vector<8x512xf32>
    %251 = arith.addf %250, %249 : vector<8x512xf32>
    %252 = arith.divf %250, %251 : vector<8x512xf32>
    %c16_52 = arith.constant 16 : index
    %253 = memref.load %arg4[%c16_52] : memref<32xf32, #tpu.memory_space<smem>>
    %254 = vector.broadcast %253 : f32 to vector<8x512xf32>
    %255 = arith.mulf %252, %254 : vector<8x512xf32>
    %256 = arith.addf %241, %255 : vector<8x512xf32>
    %c17 = arith.constant 17 : index
    %257 = memref.load %arg2[%c17] : memref<32xf32, #tpu.memory_space<smem>>
    %258 = vector.broadcast %257 : f32 to vector<8x512xf32>
    %259 = arith.mulf %0, %258 : vector<8x512xf32>
    %c17_53 = arith.constant 17 : index
    %260 = memref.load %arg3[%c17_53] : memref<32xf32, #tpu.memory_space<smem>>
    %261 = vector.broadcast %260 : f32 to vector<8x512xf32>
    %262 = arith.addf %259, %261 : vector<8x512xf32>
    %263 = arith.negf %262 : vector<8x512xf32>
    %264 = math.exp %263 : vector<8x512xf32>
    %cst_54 = arith.constant 1.000000e+00 : f32
    %265 = vector.broadcast %cst_54 : f32 to vector<8x512xf32>
    %266 = arith.addf %265, %264 : vector<8x512xf32>
    %267 = arith.divf %265, %266 : vector<8x512xf32>
    %c17_55 = arith.constant 17 : index
    %268 = memref.load %arg4[%c17_55] : memref<32xf32, #tpu.memory_space<smem>>
    %269 = vector.broadcast %268 : f32 to vector<8x512xf32>
    %270 = arith.mulf %267, %269 : vector<8x512xf32>
    %271 = arith.addf %256, %270 : vector<8x512xf32>
    %c18 = arith.constant 18 : index
    %272 = memref.load %arg2[%c18] : memref<32xf32, #tpu.memory_space<smem>>
    %273 = vector.broadcast %272 : f32 to vector<8x512xf32>
    %274 = arith.mulf %0, %273 : vector<8x512xf32>
    %c18_56 = arith.constant 18 : index
    %275 = memref.load %arg3[%c18_56] : memref<32xf32, #tpu.memory_space<smem>>
    %276 = vector.broadcast %275 : f32 to vector<8x512xf32>
    %277 = arith.addf %274, %276 : vector<8x512xf32>
    %278 = arith.negf %277 : vector<8x512xf32>
    %279 = math.exp %278 : vector<8x512xf32>
    %cst_57 = arith.constant 1.000000e+00 : f32
    %280 = vector.broadcast %cst_57 : f32 to vector<8x512xf32>
    %281 = arith.addf %280, %279 : vector<8x512xf32>
    %282 = arith.divf %280, %281 : vector<8x512xf32>
    %c18_58 = arith.constant 18 : index
    %283 = memref.load %arg4[%c18_58] : memref<32xf32, #tpu.memory_space<smem>>
    %284 = vector.broadcast %283 : f32 to vector<8x512xf32>
    %285 = arith.mulf %282, %284 : vector<8x512xf32>
    %286 = arith.addf %271, %285 : vector<8x512xf32>
    %c19 = arith.constant 19 : index
    %287 = memref.load %arg2[%c19] : memref<32xf32, #tpu.memory_space<smem>>
    %288 = vector.broadcast %287 : f32 to vector<8x512xf32>
    %289 = arith.mulf %0, %288 : vector<8x512xf32>
    %c19_59 = arith.constant 19 : index
    %290 = memref.load %arg3[%c19_59] : memref<32xf32, #tpu.memory_space<smem>>
    %291 = vector.broadcast %290 : f32 to vector<8x512xf32>
    %292 = arith.addf %289, %291 : vector<8x512xf32>
    %293 = arith.negf %292 : vector<8x512xf32>
    %294 = math.exp %293 : vector<8x512xf32>
    %cst_60 = arith.constant 1.000000e+00 : f32
    %295 = vector.broadcast %cst_60 : f32 to vector<8x512xf32>
    %296 = arith.addf %295, %294 : vector<8x512xf32>
    %297 = arith.divf %295, %296 : vector<8x512xf32>
    %c19_61 = arith.constant 19 : index
    %298 = memref.load %arg4[%c19_61] : memref<32xf32, #tpu.memory_space<smem>>
    %299 = vector.broadcast %298 : f32 to vector<8x512xf32>
    %300 = arith.mulf %297, %299 : vector<8x512xf32>
    %301 = arith.addf %286, %300 : vector<8x512xf32>
    %c20 = arith.constant 20 : index
    %302 = memref.load %arg2[%c20] : memref<32xf32, #tpu.memory_space<smem>>
    %303 = vector.broadcast %302 : f32 to vector<8x512xf32>
    %304 = arith.mulf %0, %303 : vector<8x512xf32>
    %c20_62 = arith.constant 20 : index
    %305 = memref.load %arg3[%c20_62] : memref<32xf32, #tpu.memory_space<smem>>
    %306 = vector.broadcast %305 : f32 to vector<8x512xf32>
    %307 = arith.addf %304, %306 : vector<8x512xf32>
    %308 = arith.negf %307 : vector<8x512xf32>
    %309 = math.exp %308 : vector<8x512xf32>
    %cst_63 = arith.constant 1.000000e+00 : f32
    %310 = vector.broadcast %cst_63 : f32 to vector<8x512xf32>
    %311 = arith.addf %310, %309 : vector<8x512xf32>
    %312 = arith.divf %310, %311 : vector<8x512xf32>
    %c20_64 = arith.constant 20 : index
    %313 = memref.load %arg4[%c20_64] : memref<32xf32, #tpu.memory_space<smem>>
    %314 = vector.broadcast %313 : f32 to vector<8x512xf32>
    %315 = arith.mulf %312, %314 : vector<8x512xf32>
    %316 = arith.addf %301, %315 : vector<8x512xf32>
    %c21 = arith.constant 21 : index
    %317 = memref.load %arg2[%c21] : memref<32xf32, #tpu.memory_space<smem>>
    %318 = vector.broadcast %317 : f32 to vector<8x512xf32>
    %319 = arith.mulf %0, %318 : vector<8x512xf32>
    %c21_65 = arith.constant 21 : index
    %320 = memref.load %arg3[%c21_65] : memref<32xf32, #tpu.memory_space<smem>>
    %321 = vector.broadcast %320 : f32 to vector<8x512xf32>
    %322 = arith.addf %319, %321 : vector<8x512xf32>
    %323 = arith.negf %322 : vector<8x512xf32>
    %324 = math.exp %323 : vector<8x512xf32>
    %cst_66 = arith.constant 1.000000e+00 : f32
    %325 = vector.broadcast %cst_66 : f32 to vector<8x512xf32>
    %326 = arith.addf %325, %324 : vector<8x512xf32>
    %327 = arith.divf %325, %326 : vector<8x512xf32>
    %c21_67 = arith.constant 21 : index
    %328 = memref.load %arg4[%c21_67] : memref<32xf32, #tpu.memory_space<smem>>
    %329 = vector.broadcast %328 : f32 to vector<8x512xf32>
    %330 = arith.mulf %327, %329 : vector<8x512xf32>
    %331 = arith.addf %316, %330 : vector<8x512xf32>
    %c22 = arith.constant 22 : index
    %332 = memref.load %arg2[%c22] : memref<32xf32, #tpu.memory_space<smem>>
    %333 = vector.broadcast %332 : f32 to vector<8x512xf32>
    %334 = arith.mulf %0, %333 : vector<8x512xf32>
    %c22_68 = arith.constant 22 : index
    %335 = memref.load %arg3[%c22_68] : memref<32xf32, #tpu.memory_space<smem>>
    %336 = vector.broadcast %335 : f32 to vector<8x512xf32>
    %337 = arith.addf %334, %336 : vector<8x512xf32>
    %338 = arith.negf %337 : vector<8x512xf32>
    %339 = math.exp %338 : vector<8x512xf32>
    %cst_69 = arith.constant 1.000000e+00 : f32
    %340 = vector.broadcast %cst_69 : f32 to vector<8x512xf32>
    %341 = arith.addf %340, %339 : vector<8x512xf32>
    %342 = arith.divf %340, %341 : vector<8x512xf32>
    %c22_70 = arith.constant 22 : index
    %343 = memref.load %arg4[%c22_70] : memref<32xf32, #tpu.memory_space<smem>>
    %344 = vector.broadcast %343 : f32 to vector<8x512xf32>
    %345 = arith.mulf %342, %344 : vector<8x512xf32>
    %346 = arith.addf %331, %345 : vector<8x512xf32>
    %c23 = arith.constant 23 : index
    %347 = memref.load %arg2[%c23] : memref<32xf32, #tpu.memory_space<smem>>
    %348 = vector.broadcast %347 : f32 to vector<8x512xf32>
    %349 = arith.mulf %0, %348 : vector<8x512xf32>
    %c23_71 = arith.constant 23 : index
    %350 = memref.load %arg3[%c23_71] : memref<32xf32, #tpu.memory_space<smem>>
    %351 = vector.broadcast %350 : f32 to vector<8x512xf32>
    %352 = arith.addf %349, %351 : vector<8x512xf32>
    %353 = arith.negf %352 : vector<8x512xf32>
    %354 = math.exp %353 : vector<8x512xf32>
    %cst_72 = arith.constant 1.000000e+00 : f32
    %355 = vector.broadcast %cst_72 : f32 to vector<8x512xf32>
    %356 = arith.addf %355, %354 : vector<8x512xf32>
    %357 = arith.divf %355, %356 : vector<8x512xf32>
    %c23_73 = arith.constant 23 : index
    %358 = memref.load %arg4[%c23_73] : memref<32xf32, #tpu.memory_space<smem>>
    %359 = vector.broadcast %358 : f32 to vector<8x512xf32>
    %360 = arith.mulf %357, %359 : vector<8x512xf32>
    %361 = arith.addf %346, %360 : vector<8x512xf32>
    %c24 = arith.constant 24 : index
    %362 = memref.load %arg2[%c24] : memref<32xf32, #tpu.memory_space<smem>>
    %363 = vector.broadcast %362 : f32 to vector<8x512xf32>
    %364 = arith.mulf %0, %363 : vector<8x512xf32>
    %c24_74 = arith.constant 24 : index
    %365 = memref.load %arg3[%c24_74] : memref<32xf32, #tpu.memory_space<smem>>
    %366 = vector.broadcast %365 : f32 to vector<8x512xf32>
    %367 = arith.addf %364, %366 : vector<8x512xf32>
    %368 = arith.negf %367 : vector<8x512xf32>
    %369 = math.exp %368 : vector<8x512xf32>
    %cst_75 = arith.constant 1.000000e+00 : f32
    %370 = vector.broadcast %cst_75 : f32 to vector<8x512xf32>
    %371 = arith.addf %370, %369 : vector<8x512xf32>
    %372 = arith.divf %370, %371 : vector<8x512xf32>
    %c24_76 = arith.constant 24 : index
    %373 = memref.load %arg4[%c24_76] : memref<32xf32, #tpu.memory_space<smem>>
    %374 = vector.broadcast %373 : f32 to vector<8x512xf32>
    %375 = arith.mulf %372, %374 : vector<8x512xf32>
    %376 = arith.addf %361, %375 : vector<8x512xf32>
    %c25 = arith.constant 25 : index
    %377 = memref.load %arg2[%c25] : memref<32xf32, #tpu.memory_space<smem>>
    %378 = vector.broadcast %377 : f32 to vector<8x512xf32>
    %379 = arith.mulf %0, %378 : vector<8x512xf32>
    %c25_77 = arith.constant 25 : index
    %380 = memref.load %arg3[%c25_77] : memref<32xf32, #tpu.memory_space<smem>>
    %381 = vector.broadcast %380 : f32 to vector<8x512xf32>
    %382 = arith.addf %379, %381 : vector<8x512xf32>
    %383 = arith.negf %382 : vector<8x512xf32>
    %384 = math.exp %383 : vector<8x512xf32>
    %cst_78 = arith.constant 1.000000e+00 : f32
    %385 = vector.broadcast %cst_78 : f32 to vector<8x512xf32>
    %386 = arith.addf %385, %384 : vector<8x512xf32>
    %387 = arith.divf %385, %386 : vector<8x512xf32>
    %c25_79 = arith.constant 25 : index
    %388 = memref.load %arg4[%c25_79] : memref<32xf32, #tpu.memory_space<smem>>
    %389 = vector.broadcast %388 : f32 to vector<8x512xf32>
    %390 = arith.mulf %387, %389 : vector<8x512xf32>
    %391 = arith.addf %376, %390 : vector<8x512xf32>
    %c26 = arith.constant 26 : index
    %392 = memref.load %arg2[%c26] : memref<32xf32, #tpu.memory_space<smem>>
    %393 = vector.broadcast %392 : f32 to vector<8x512xf32>
    %394 = arith.mulf %0, %393 : vector<8x512xf32>
    %c26_80 = arith.constant 26 : index
    %395 = memref.load %arg3[%c26_80] : memref<32xf32, #tpu.memory_space<smem>>
    %396 = vector.broadcast %395 : f32 to vector<8x512xf32>
    %397 = arith.addf %394, %396 : vector<8x512xf32>
    %398 = arith.negf %397 : vector<8x512xf32>
    %399 = math.exp %398 : vector<8x512xf32>
    %cst_81 = arith.constant 1.000000e+00 : f32
    %400 = vector.broadcast %cst_81 : f32 to vector<8x512xf32>
    %401 = arith.addf %400, %399 : vector<8x512xf32>
    %402 = arith.divf %400, %401 : vector<8x512xf32>
    %c26_82 = arith.constant 26 : index
    %403 = memref.load %arg4[%c26_82] : memref<32xf32, #tpu.memory_space<smem>>
    %404 = vector.broadcast %403 : f32 to vector<8x512xf32>
    %405 = arith.mulf %402, %404 : vector<8x512xf32>
    %406 = arith.addf %391, %405 : vector<8x512xf32>
    %c27 = arith.constant 27 : index
    %407 = memref.load %arg2[%c27] : memref<32xf32, #tpu.memory_space<smem>>
    %408 = vector.broadcast %407 : f32 to vector<8x512xf32>
    %409 = arith.mulf %0, %408 : vector<8x512xf32>
    %c27_83 = arith.constant 27 : index
    %410 = memref.load %arg3[%c27_83] : memref<32xf32, #tpu.memory_space<smem>>
    %411 = vector.broadcast %410 : f32 to vector<8x512xf32>
    %412 = arith.addf %409, %411 : vector<8x512xf32>
    %413 = arith.negf %412 : vector<8x512xf32>
    %414 = math.exp %413 : vector<8x512xf32>
    %cst_84 = arith.constant 1.000000e+00 : f32
    %415 = vector.broadcast %cst_84 : f32 to vector<8x512xf32>
    %416 = arith.addf %415, %414 : vector<8x512xf32>
    %417 = arith.divf %415, %416 : vector<8x512xf32>
    %c27_85 = arith.constant 27 : index
    %418 = memref.load %arg4[%c27_85] : memref<32xf32, #tpu.memory_space<smem>>
    %419 = vector.broadcast %418 : f32 to vector<8x512xf32>
    %420 = arith.mulf %417, %419 : vector<8x512xf32>
    %421 = arith.addf %406, %420 : vector<8x512xf32>
    %c28 = arith.constant 28 : index
    %422 = memref.load %arg2[%c28] : memref<32xf32, #tpu.memory_space<smem>>
    %423 = vector.broadcast %422 : f32 to vector<8x512xf32>
    %424 = arith.mulf %0, %423 : vector<8x512xf32>
    %c28_86 = arith.constant 28 : index
    %425 = memref.load %arg3[%c28_86] : memref<32xf32, #tpu.memory_space<smem>>
    %426 = vector.broadcast %425 : f32 to vector<8x512xf32>
    %427 = arith.addf %424, %426 : vector<8x512xf32>
    %428 = arith.negf %427 : vector<8x512xf32>
    %429 = math.exp %428 : vector<8x512xf32>
    %cst_87 = arith.constant 1.000000e+00 : f32
    %430 = vector.broadcast %cst_87 : f32 to vector<8x512xf32>
    %431 = arith.addf %430, %429 : vector<8x512xf32>
    %432 = arith.divf %430, %431 : vector<8x512xf32>
    %c28_88 = arith.constant 28 : index
    %433 = memref.load %arg4[%c28_88] : memref<32xf32, #tpu.memory_space<smem>>
    %434 = vector.broadcast %433 : f32 to vector<8x512xf32>
    %435 = arith.mulf %432, %434 : vector<8x512xf32>
    %436 = arith.addf %421, %435 : vector<8x512xf32>
    %c29 = arith.constant 29 : index
    %437 = memref.load %arg2[%c29] : memref<32xf32, #tpu.memory_space<smem>>
    %438 = vector.broadcast %437 : f32 to vector<8x512xf32>
    %439 = arith.mulf %0, %438 : vector<8x512xf32>
    %c29_89 = arith.constant 29 : index
    %440 = memref.load %arg3[%c29_89] : memref<32xf32, #tpu.memory_space<smem>>
    %441 = vector.broadcast %440 : f32 to vector<8x512xf32>
    %442 = arith.addf %439, %441 : vector<8x512xf32>
    %443 = arith.negf %442 : vector<8x512xf32>
    %444 = math.exp %443 : vector<8x512xf32>
    %cst_90 = arith.constant 1.000000e+00 : f32
    %445 = vector.broadcast %cst_90 : f32 to vector<8x512xf32>
    %446 = arith.addf %445, %444 : vector<8x512xf32>
    %447 = arith.divf %445, %446 : vector<8x512xf32>
    %c29_91 = arith.constant 29 : index
    %448 = memref.load %arg4[%c29_91] : memref<32xf32, #tpu.memory_space<smem>>
    %449 = vector.broadcast %448 : f32 to vector<8x512xf32>
    %450 = arith.mulf %447, %449 : vector<8x512xf32>
    %451 = arith.addf %436, %450 : vector<8x512xf32>
    %c30 = arith.constant 30 : index
    %452 = memref.load %arg2[%c30] : memref<32xf32, #tpu.memory_space<smem>>
    %453 = vector.broadcast %452 : f32 to vector<8x512xf32>
    %454 = arith.mulf %0, %453 : vector<8x512xf32>
    %c30_92 = arith.constant 30 : index
    %455 = memref.load %arg3[%c30_92] : memref<32xf32, #tpu.memory_space<smem>>
    %456 = vector.broadcast %455 : f32 to vector<8x512xf32>
    %457 = arith.addf %454, %456 : vector<8x512xf32>
    %458 = arith.negf %457 : vector<8x512xf32>
    %459 = math.exp %458 : vector<8x512xf32>
    %cst_93 = arith.constant 1.000000e+00 : f32
    %460 = vector.broadcast %cst_93 : f32 to vector<8x512xf32>
    %461 = arith.addf %460, %459 : vector<8x512xf32>
    %462 = arith.divf %460, %461 : vector<8x512xf32>
    %c30_94 = arith.constant 30 : index
    %463 = memref.load %arg4[%c30_94] : memref<32xf32, #tpu.memory_space<smem>>
    %464 = vector.broadcast %463 : f32 to vector<8x512xf32>
    %465 = arith.mulf %462, %464 : vector<8x512xf32>
    %466 = arith.addf %451, %465 : vector<8x512xf32>
    %c31 = arith.constant 31 : index
    %467 = memref.load %arg2[%c31] : memref<32xf32, #tpu.memory_space<smem>>
    %468 = vector.broadcast %467 : f32 to vector<8x512xf32>
    %469 = arith.mulf %0, %468 : vector<8x512xf32>
    %c31_95 = arith.constant 31 : index
    %470 = memref.load %arg3[%c31_95] : memref<32xf32, #tpu.memory_space<smem>>
    %471 = vector.broadcast %470 : f32 to vector<8x512xf32>
    %472 = arith.addf %469, %471 : vector<8x512xf32>
    %473 = arith.negf %472 : vector<8x512xf32>
    %474 = math.exp %473 : vector<8x512xf32>
    %cst_96 = arith.constant 1.000000e+00 : f32
    %475 = vector.broadcast %cst_96 : f32 to vector<8x512xf32>
    %476 = arith.addf %475, %474 : vector<8x512xf32>
    %477 = arith.divf %475, %476 : vector<8x512xf32>
    %c31_97 = arith.constant 31 : index
    %478 = memref.load %arg4[%c31_97] : memref<32xf32, #tpu.memory_space<smem>>
    %479 = vector.broadcast %478 : f32 to vector<8x512xf32>
    %480 = arith.mulf %477, %479 : vector<8x512xf32>
    %481 = arith.addf %466, %480 : vector<8x512xf32>
    %c0_98 = arith.constant 0 : index
    %482 = memref.load %arg5[%c0_98] : memref<1xf32, #tpu.memory_space<smem>>
    %483 = vector.broadcast %482 : f32 to vector<8x512xf32>
    %484 = arith.addf %481, %483 : vector<8x512xf32>
    %485 = arith.negf %484 : vector<8x512xf32>
    %486 = math.exp %485 : vector<8x512xf32>
    %cst_99 = arith.constant 1.000000e+00 : f32
    %487 = vector.broadcast %cst_99 : f32 to vector<8x512xf32>
    %488 = arith.addf %487, %486 : vector<8x512xf32>
    %489 = arith.divf %487, %488 : vector<8x512xf32>
    %c0_100 = arith.constant 0 : index
    %c0_101 = arith.constant 0 : index
    %490 = vector.load %arg6[%c0_100, %c0_101] : memref<8x512xf32, #tpu.memory_space<vmem>>, vector<8x512xf32>
    tpu.vector_store %arg6[%c0_100, %c0_101], %489 {strides = array<i32>} : memref<8x512xf32, #tpu.memory_space<vmem>>, vector<8x512xf32>,
    return
  }
  func.func @transform_0(%arg0: i32) -> (i32, i32) {
    %c0_i32 = arith.constant 0 : i32
    %c0_i32_0 = arith.constant 0 : i32
    return %arg0, %c0_i32 : i32, i32
  }
  func.func @transform_1(%arg0: i32) -> i32 {
    %c0_i32 = arith.constant 0 : i32
    %c0_i32_0 = arith.constant 0 : i32
    return %c0_i32 : i32
  }
  func.func @transform_2(%arg0: i32) -> i32 {
    %c0_i32 = arith.constant 0 : i32
    %c0_i32_0 = arith.constant 0 : i32
    return %c0_i32 : i32
  }
  func.func @transform_3(%arg0: i32) -> i32 {
    %c0_i32 = arith.constant 0 : i32
    %c0_i32_0 = arith.constant 0 : i32
    return %c0_i32 : i32
  }
  func.func @transform_4(%arg0: i32) -> i32 {
    %c0_i32 = arith.constant 0 : i32
    %c0_i32_0 = arith.constant 0 : i32
    return %c0_i32 : i32
  }
  func.func @transform_5(%arg0: i32) -> (i32, i32) {
    %c0_i32 = arith.constant 0 : i32
    %c0_i32_0 = arith.constant 0 : i32
    return %arg0, %c0_i32 : i32, i32
  }
}

</mosaic_0001>

<bundles_post_ra>
// kernel: tpu_custom_call.1
= control target key start
LH: loop header
LB: loop body
LE: loop exit
PB: predicated region body
PF: predicated region fallthrough
CT: control target
= control target key end

     0   :  { %s4017_s0 = inlined_call_operand.hbm [shape: f32[16,512], index: 0, kind: input, shape index: {}]   ;;  %s4018_s1 = inlined_call_operand.vmem [shape: f32[32], index: 1, kind: input, shape index: {}]   ;;  %s4019_s2 = inlined_call_operand.vmem [shape: f32[32], index: 2, kind: input, shape index: {}]   ;;  %s4020_s3 = inlined_call_operand.vmem [shape: f32[32], index: 3, kind: input, shape index: {}]   ;;  %s4021_s4 = inlined_call_operand.<no memory space> [shape: f32[1], index: 4, kind: input, shape index: {}]   ;;  %s4022_s5 = inlined_call_operand.hbm [shape: f32[16,512], index: 5, kind: output, shape index: {}]  }
   0x1   :  { %10 = sst [smem:[#allocation2]] %s4021_s4 }
   0x2   :  { %11 = vsyncpa [#allocation4], 0 }
   0x3   :  { %13 = vsyncpa [#allocation4 + $0x1], 0 }
   0x4   :  { %14 = vsyncpa [#allocation6], 0 }
   0x5   :  { %15 = vsyncpa [#allocation9], 0 }
   0x6   :  { %16 = vsyncpa [#allocation5], 0 }
   0x7   :  { %18 = vsyncpa [#allocation5 + $0x1], 0  ;;  %s2952_s20 = smov 0   ;;  %s2954_s21 = smov 0  }
   0x8   :  { %s2956_s22 = smov 0   ;;  %s2958_s23 = smov 0  }
   0x9 LB: > { %s2973_s4 = sadd.s32 4294967295, %s2912_s23   ;;  %s1907_s24 = sadd.s32 4294967294, %s2912_s23   ;;  %s2912_s23 = sphi %s2958_s23, %s4046_s23   ;;  %s2908_s22 = sphi %s2956_s22, %s4045_s22   ;;  %s2904_s21 = sphi %s2954_s21, %s4044_s21   ;;  %s2900_s20 = sphi %s2952_s20, %s4043_s20  }
   0xa   : > { %p44_p0 = scmp.ne.s32.totalorder %s2904_s21, %s2900_s20  ;;  %p4023_p1 = scmp.eq.s32.totalorder %s2973_s4, 0 }
   0xb   : > { %p158_p3 = scmp.eq.s32.totalorder %s1907_s24, 1  ;;  %p1908_p5 = scmp.ge.s32.totalorder %s2912_s23, 1 }
   0xc   : > { %p2982_p4 = por %p4023_p1, %p44_p0  ;;  %p165_p7 = scmp.lt.s32.totalorder %s2912_s23, 3 }
   0xd   : > { %p2987_p6 = por %p158_p3, %p44_p0  ;;  %s189_s29 = sshll.u32 %s4019_s2, 4  ;;  %s190_s29 = int_to_ptr.vmem [resolvable:$true] %s189_s29 }
   0xe   : > { %s4027_s25 = scalar_select %p2982_p4, 1, 0 }
   0xf   : > { %s4028_s26 = scalar_select %p2987_p6, 1, 0 }
  0x10   : > { %p2995_p8 = pnand %p1908_p5, %p165_p7  ;;  %s178_s8 = sshll.u32 %s4018_s1, 4  ;;  %s179_s8 = int_to_ptr.vmem [resolvable:$true] %s178_s8 }
  0x11   : > { %s200_s12 = sshll.u32 %s4020_s3, 4  ;;  %s2767_s13 = scalar_lea.vmem %s190_s29, 16  ;;  %s3014_s12 = int_to_ptr.vmem [resolvable:$true] %s200_s12 }
  0x12   : > { %s4029_s30 = scalar_select %p2995_p8, 1, 0 }
  0x13   : > { %p2170_p10 = pneg %p2995_p8  ;;  %p2768_p12 = scmp.ne.s32.totalorder %s190_s29, %s2767_s13 }
  0x14   : > { %p2775_p5 = scmp.lt.s32.totalorder %s190_s29, %s190_s29  ;;  %p2776_p7 = scmp.lt.s32.totalorder %s2767_s13, %s2767_s13 }
  0x15   : > { %p3007_p11 = pnand %p2170_p10, %p4023_p1 }
  0x16   : > { %p2777_p10 = por %p2776_p7, %p2775_p5 }
  0x17   : > { %p2769_p13 = pneg %p3007_p11 }
  0x19   : > { %p2770_p0 = pnand %p2769_p13, %p2768_p12 }
  0x1b   : > { %p2771_p3 = pneg %p2770_p0 }
  0x1d   : > { %p2778_p9 = pnand %p2777_p10, %p2771_p3 }
  0x1f   : > { %2781 = shalt.err (!%p2778_p9)
}
  0x20   : > { %s2914_s14 = smov [#allocation8]   ;;  %s2782_s15 = scalar_lea.vmem %s179_s8, 16 }
  0x21   : > { %2176 = dma.vmem_to_smem (!%p3007_p11), %s190_s29, 16, %s2914_s14, [#allocation9]  }
  0x22   : > { %p2783_p1 = scmp.ne.s32.totalorder %s179_s8, %s2782_s15  ;;  %p2790_p4 = scmp.lt.s32.totalorder %s179_s8, %s179_s8 }
  0x23   : > { %p2791_p8 = scmp.lt.s32.totalorder %s2782_s15, %s2782_s15 }
  0x24   : > { %p2785_p2 = pnand %p2783_p1, %p2769_p13 }
  0x25   : > { %p2792_p12 = por %p2791_p8, %p2790_p4 }
  0x26   : > { %p2786_p6 = pneg %p2785_p2 }
  0x28   : > { %p2793_p0 = pnand %p2792_p12, %p2786_p6 }
  0x2a   : > { %2796 = shalt.err (!%p2793_p0)
}
  0x2b   : > { %s2915_s16 = smov [#allocation7]   ;;  %s2797_s17 = scalar_lea.vmem %s3014_s12, 16 }
  0x2c   : > { %2173 = dma.vmem_to_smem (!%p3007_p11), %s179_s8, 16, %s2915_s16, [#allocation6]  }
  0x2d   : > { %p2798_p9 = scmp.ne.s32.totalorder %s3014_s12, %s2797_s17  ;;  %p2805_p2 = scmp.lt.s32.totalorder %s3014_s12, %s3014_s12 }
  0x2e   : > { %p2806_p5 = scmp.lt.s32.totalorder %s2797_s17, %s2797_s17 }
  0x2f   : > { %p2800_p3 = pnand %p2798_p9, %p2769_p13 }
  0x30   : > { %p2807_p4 = por %p2806_p5, %p2805_p2 }
  0x31   : > { %p2801_p1 = pneg %p2800_p3 }
  0x33   : > { %p2808_p6 = pnand %p2807_p4, %p2801_p1 }
  0x35   : > { %2811 = shalt.err (!%p2808_p6)
}
  0x36   : > { %s2916_s18 = smov [#allocation10]   ;;  %s3039_s19 = sadd.s32 1, %s2912_s23  }
  0x37   : > { %2179 = dma.vmem_to_smem (!%p3007_p11), %s3014_s12, 16, %s2916_s18, [#allocation9]  }
  0x38   : > { %s28_s24 = ssub.s32 %s2912_s23, %s3039_s19  ;;  %s31_s27 = sadd.s32 1, %s2908_s22 }
  0x39   : > { %p29_p8 = scmp.eq.s32.totalorder %s28_s24, 0  ;;  %p38_p13 = scmp.ne.s32.totalorder %s2908_s22, %s2904_s21 }
  0x3a   : > { %p39_p7 = scmp.eq.s32.totalorder %s2912_s23, 0  ;;  %p2191_p10 = scmp.lt.s32.totalorder %s2912_s23, 2 }
  0x3b   : > { %s3049_s28 = scalar_select %p29_p8, %s2908_s22, %s31_s27  }
  0x3c   : > { %p40_p12 = por %p39_p7, %p38_p13  ;;  %p4031_p0 = scmp.eq.s32.totalorder %s2973_s4, 1 }
  0x3d   : > { %s214_s6 = sand.u32 1, %s2908_s22   ;;  %s2152_s7 = sshll.u32 %s2912_s23, 9 }
  0x3e   : > { %p3053_p9 = por %p4031_p0, %p38_p13  ;;  %s1913_s8 = sshll.u32 %s214_s6, 5 }
  0x3f   : > { %s3062_s11 = scalar_lea.hbm %s4017_s0, %s2152_s7  ;;  %s218_s12 = scalar_lea.vmem [#allocation3], %s1913_s8 }
  0x40   : > { %s4032_s29 = scalar_select %p3053_p9, 1, 0 }
  0x41   : > { %s226_s13 = sshll.u32 %s218_s12, 4  ;;  %p3064_p11 = pnand %p2191_p10, %p40_p12  ;;  %s227_s13 = int_to_ptr.vmem [resolvable:$true] %s226_s13 }
  0x42   : > { %s215_s15 = scalar_lea.sflag [#allocation4], %s214_s6  ;;  %s2812_s16 = scalar_lea.hbm %s3062_s11, 512 }
  0x43   : > { %p2813_p3 = scmp.ne.s32.totalorder %s3062_s11, %s2812_s16  ;;  %p2814_p1 = pneg %p3064_p11 }
  0x44   : > { %s2817_s24 = scalar_lea.hbm %s4017_s0, 1024  ;;  %p2818_p4 = scmp.lt.s32.totalorder %s3062_s11, %s4017_s0 }
  0x45   : > { %p2815_p2 = pnand %p2814_p1, %p2813_p3  ;;  %p2819_p6 = scmp.lt.s32.totalorder %s2817_s24, %s2812_s16 }
  0x47   : > { %p2816_p5 = pneg %p2815_p2  ;;  %p2820_p8 = por %p2819_p6, %p2818_p4 }
  0x49   : > { %p2821_p13 = pnand %p2820_p8, %p2816_p5 }
  0x4b   : > { %2824 = shalt.err (!%p2821_p13)
}
  0x4c   : > { %s2825_s8 = scalar_lea.vmem %s227_s13, 512  ;;  %s2917_s6 = smov [#allocation3]  }
  0x4d   : > { %p2826_p7 = scmp.ne.s32.totalorder %s227_s13, %s2825_s8  ;;  %s2830_s9 = sshll.u32 %s2917_s6, 4  ;;  %s2831_s9 = int_to_ptr.vmem [resolvable:$false] %s2830_s9 }
  0x4e   : > { %s2832_s10 = scalar_lea.vmem %s2831_s9, 1024  ;;  %p2833_p0 = scmp.lt.s32.totalorder %s227_s13, %s2831_s9 }
  0x4f   : > { %p2828_p10 = pnand %p2826_p7, %p2814_p1  ;;  %p2834_p3 = scmp.lt.s32.totalorder %s2832_s10, %s2825_s8 }
  0x51   : > { %p2829_p12 = pneg %p2828_p10  ;;  %p2835_p2 = por %p2834_p3, %p2833_p0 }
  0x53   : > { %p2836_p9 = pnand %p2835_p2, %p2829_p12 }
  0x55   : > { %2839 = shalt.err (!%p2836_p9)
}
  0x56   : > { %2183 = dma.hbm_to_vmem [thread:$0]  (!%p3064_p11), %s3062_s11, 512, %s227_s13, %s215_s15  }
  0x57   : > { %p4034_p5 = scmp.ne.s32.totalorder %s4029_s30, 0 }
  0x58   : > { %s3085_s12 = sand.u32 (!%p4034_p5), 1, %s2904_s21   ;;  %p4035_p9 = scmp.ne.s32.totalorder (!%p4034_p5), %s4027_s25, 0 }
  0x59   : > { %235 = sbr.rel (%p4034_p5) target bundleno = 454 (0x1c6), region = 40  ;;  %s1917_s16 = sshll.u32 (!%p4034_p5), %s3085_s12, 5 }
  0x5a   : > { %s238_s17 = scalar_lea.sflag (!%p4034_p5), [#allocation4], %s3085_s12  ;;  %s3091_s18 = scalar_lea.vmem (!%p4034_p5), [#allocation3], %s1917_s16 }
  0x5e   : > { %2883 = dma.done.wait (%p4035_p9), %s238_s17, 512  }
  0x5f   : > { %2885 = vsyncadd (%p4035_p9), %s238_s17, 4294966784  ;;  %p4036_p11 = scmp.eq.s32.totalorder %s2973_s4, 0 }
  0x61   : > { %2887 = dma.done.wait (%p4036_p11), [#allocation6], 16   ;;  %p4037_p1 = pmov %p4036_p11 }
  0x63   : > { %2889 = vsyncadd (%p4037_p1), [#allocation6], 4294967280  ;;  %p4038_p4 = pmov %p4037_p1 }
  0x64   : > { %p4039_p6 = pmov %p4037_p1 }
  0x65   : > { %2891 = dma.done.wait (%p4038_p4), [#allocation9], 32  }
  0x66   : > { %2893 = vsyncadd (%p4039_p6), [#allocation9], 4294967264 }
  0x67   : > { %258 = sfence }
  0x68   : > { %s285_s30 = sld [smem:[#allocation7]]  ;;  %v3106_v0 = vld [vmem:[%s3091_s18] sm:$0xff]  ;;  %v3109_v1 = vld [vmem:[%s3091_s18 + $0x8] sm:$0xff]  ;;  %v3112_v2 = vld [vmem:[%s3091_s18 + $0x10] sm:$0xff]  ;;  %p4040_p13 = scmp.ne.s32.totalorder %s4032_s29, 0 }
  0x69   : > { %s291_s25 = sld [smem:[#allocation8]]  ;;  %v3115_v3 = vld [vmem:[%s3091_s18 + $0x18] sm:$0xff] }
  0x6a   : > { %s1926_s11 = sld [smem:[#allocation7 + $0x1]] }
  0x6b   : > { %s1927_s13 = sld [smem:[#allocation8 + $0x1]] }
  0x6c   : > { %s1933_s14 = sld [smem:[#allocation7 + $0x2]] }
  0x6d   : > { %s1934_s15 = sld [smem:[#allocation8 + $0x2]] }
  0x6e   : > { %v286_v4 = vstv %s285_s30  ;;  %s1940_s24 = sld [smem:[#allocation7 + $0x3]] }
  0x6f   : > { %v287_v5 = vmul.f32 %v286_v4, %v3106_v0  ;;  %v288_v6 = vmul.f32 %v286_v4, %v3109_v1  ;;  %v289_v7 = vmul.f32 %v286_v4, %v3112_v2  ;;  %v290_v8 = vmul.f32 %v286_v4, %v3115_v3  ;;  %s1941_s27 = sld [smem:[#allocation8 + $0x3]] }
  0x70   : > { %v292_v9 = vstv %s291_s25  ;;  %v332_v14 = vstv %s1926_s11  ;;  %s1947_s7 = sld [smem:[#allocation7 + $0x4]] }
  0x71   : > { %v293_v10 = vadd.f32 %v292_v9, %v287_v5  ;;  %v294_v11 = vadd.f32 %v292_v9, %v288_v6  ;;  %v295_v12 = vadd.f32 %v292_v9, %v289_v7  ;;  %v296_v13 = vadd.f32 %v292_v9, %v290_v8  ;;  %s1948_s8 = sld [smem:[#allocation8 + $0x4]] }
  0x72   : > { %v338_v15 = vstv %s1927_s13  ;;  %v333_v17 = vmul.f32 %v332_v14, %v3106_v0  ;;  %v334_v19 = vmul.f32 %v332_v14, %v3109_v1  ;;  %v335_v20 = vmul.f32 %v332_v14, %v3112_v2  ;;  %s3132_s6 = sld [smem:[#allocation7 + $0x5]] }
  0x73   : > { %v1922_v16 = vmul.f32 -1.442695, %v293_v10  ;;  %v1923_v18 = vmul.f32 -1.442695, %v294_v11  ;;  %v336_v21 = vmul.f32 %v332_v14, %v3115_v3  ;;  %v378_v23 = vstv %s1933_s14  ;;  %s3135_s9 = sld [smem:[#allocation8 + $0x5]] }
  0x74   : > { %v339_v22 = vadd.f32 %v338_v15, %v333_v17  ;;  %v1924_v24 = vmul.f32 -1.442695, %v295_v12  ;;  %v1925_v25 = vmul.f32 -1.442695, %v296_v13  ;;  %v340_v26 = vadd.f32 %v338_v15, %v334_v19  ;;  %s3137_s10 = sld [smem:[#allocation7 + $0x6]] }
  0x75   : > { %v341_v27 = vadd.f32 %v338_v15, %v335_v20  ;;  %2231 = vpow2.f32 %v1922_v16  ;;  %v342_v28 = vadd.f32 %v338_v15, %v336_v21  ;;  %v379_v29 = vmul.f32 %v378_v23, %v3106_v0  ;;  %s3143_s17 = sld [smem:[#allocation8 + $0x6]] }
  0x76   : > { %v380_v30 = vmul.f32 %v378_v23, %v3109_v1  ;;  %2233 = vpow2.f32 %v1923_v18  ;;  %v1928_v31 = vmul.f32 -1.442695, %v339_v22  ;;  %v1929_v32 = vmul.f32 -1.442695, %v340_v26  ;;  %s3147_s30 = sld [smem:[#allocation10]] }
  0x77   : > { %v381_v33 = vmul.f32 %v378_v23, %v3112_v2  ;;  %v382_v34 = vmul.f32 %v378_v23, %v3115_v3  ;;  %v384_v35 = vstv %s1934_s15  ;;  %2235 = vpow2.f32 %v1924_v24  ;;  %s3150_s25 = sld [smem:[#allocation10 + $0x1]] }
  0x78   : > { %v1930_v36 = vmul.f32 -1.442695, %v341_v27  ;;  %v385_v37 = vadd.f32 %v384_v35, %v379_v29  ;;  %v386_v38 = vadd.f32 %v384_v35, %v380_v30  ;;  %2237 = vpow2.f32 %v1925_v25  ;;  %s3155_s11 = sld [smem:[#allocation7 + $0x7]] }
  0x79   : > { %v1931_v39 = vmul.f32 -1.442695, %v342_v28  ;;  %v387_v40 = vadd.f32 %v384_v35, %v381_v33  ;;  %v424_v41 = vstv %s1940_s24  ;;  %2239 = vpow2.f32 %v1928_v31  ;;  %s3157_s13 = sld [smem:[#allocation10 + $0x2]] }
  0x7a   : > { %v425_v42 = vmul.f32 %v424_v41, %v3106_v0  ;;  %2241 = vpow2.f32 %v1929_v32  ;;  %v388_v43 = vadd.f32 %v384_v35, %v382_v34  ;;  %v1935_v44 = vmul.f32 -1.442695, %v385_v37  ;;  %s3160_s14 = sld [smem:[#allocation10 + $0x3]] }
  0x7b   : > { %2243 = vpow2.f32 %v1930_v36  ;;  %v1936_v45 = vmul.f32 -1.442695, %v386_v38  ;;  %v430_v46 = vstv %s1941_s27  ;;  %v1937_v47 = vmul.f32 -1.442695, %v387_v40  ;;  %s3163_s15 = sld [smem:[#allocation10 + $0x4]] }
  0x7c   : > { %2245 = vpow2.f32 %v1931_v39  ;;  %v426_v48 = vmul.f32 %v424_v41, %v3109_v1  ;;  %v431_v49 = vadd.f32 %v430_v46, %v425_v42  ;;  %v1938_v50 = vmul.f32 -1.442695, %v388_v43  ;;  %s3166_s24 = sld [smem:[#allocation8 + $0x7]] }
  0x7d   : > { %2247 = vpow2.f32 %v1935_v44  ;;  %v427_v56 = vmul.f32 %v424_v41, %v3112_v2  ;;  %v428_v4 = vmul.f32 %v424_v41, %v3115_v3  ;;  %v470_v10 = vstv %s1947_s7  ;;  %s3168_s27 = sld [smem:[#allocation10 + $0x5]] }
  0x7e   : > { %2249 = vpow2.f32 %v1936_v45  ;;  %v1942_v51 = vmul.f32 -1.442695, %v431_v49  ;;  %v432_v52 = vadd.f32 %v430_v46, %v426_v48  ;;  %v476_v15 = vstv %s1948_s8  ;;  %s3179_s7 = sld [smem:[#allocation10 + $0x6]] }
  0x7f   : > { %2251 = vpow2.f32 %v1937_v47  ;;  %v433_v7 = vadd.f32 %v430_v46, %v427_v56  ;;  %v434_v14 = vadd.f32 %v430_v46, %v428_v4  ;;  %v471_v19 = vmul.f32 %v470_v10, %v3106_v0  ;;  %s3187_s8 = sld [smem:[#allocation7 + $0x8]] }
  0x80   : > { %2253 = vpow2.f32 %v1938_v50  ;;  %v1943_v57 = vmul.f32 -1.442695, %v432_v52  ;;  %v472_v21 = vmul.f32 %v470_v10, %v3109_v1  ;;  %v473_v22 = vmul.f32 %v470_v10, %v3112_v2 }
  0x81   : > { %2255 = vpow2.f32 %v1942_v51  ;;  %v1944_v18 = vmul.f32 -1.442695, %v433_v7  ;;  %v516_v23 = vstv %s3132_s6  ;;  %v1945_v27 = vmul.f32 -1.442695, %v434_v14  ;;  %s3197_s6 = sld [smem:[#allocation8 + $0x8]] }
  0x82   : > { %v2232_v53 = vpop.eup %2231  ;;  %2257 = vpow2.f32 %v1943_v57  ;;  %v474_v28 = vmul.f32 %v470_v10, %v3115_v3  ;;  %v477_v31 = vadd.f32 %v476_v15, %v471_v19  ;;  %v517_v32 = vmul.f32 %v516_v23, %v3106_v0 }
  0x83   : > { %v2234_v54 = vpop.eup %2233  ;;  %v309_v59 = vadd.f32 1.0, %v2232_v53  ;;  %v478_v33 = vadd.f32 %v476_v15, %v472_v21  ;;  %v479_v34 = vadd.f32 %v476_v15, %v473_v22  ;;  %v522_v35 = vstv %s3135_s9  ;;  %s3202_s9 = sld [smem:[#allocation7 + $0x9]] }
  0x84   : > { %v2236_v55 = vpop.eup %2235  ;;  %v310_v61 = vadd.f32 1.0, %v2234_v54  ;;  %v518_v37 = vmul.f32 %v516_v23, %v3109_v1  ;;  %v562_v38 = vstv %s3137_s10  ;;  %v480_v40 = vadd.f32 %v476_v15, %v474_v28  ;;  %s3215_s10 = sld [smem:[#allocation8 + $0x9]] }
  0x85   : > { %v2238_v58 = vpop.eup %2237  ;;  %v311_v63 = vadd.f32 1.0, %v2236_v55  ;;  %2259 = vrcp.f32 %v309_v59  ;;  %v519_v41 = vmul.f32 %v516_v23, %v3112_v2  ;;  %v1949_v42 = vmul.f32 -1.442695, %v477_v31 }
  0x86   : > { %v2240_v60 = vpop.eup %2239  ;;  %v312_v6 = vadd.f32 1.0, %v2238_v58  ;;  %2261 = vrcp.f32 %v310_v61  ;;  %v520_v43 = vmul.f32 %v516_v23, %v3115_v3  ;;  %v523_v44 = vadd.f32 %v522_v35, %v517_v32 }
  0x87   : > { %v2242_v62 = vpop.eup %2241  ;;  %v355_v9 = vadd.f32 1.0, %v2240_v60  ;;  %2263 = vrcp.f32 %v311_v63  ;;  %v1950_v46 = vmul.f32 -1.442695, %v478_v33  ;;  %v563_v47 = vmul.f32 %v562_v38, %v3106_v0 }
  0x88   : > { %v2244_v5 = vpop.eup %2243  ;;  %v356_v11 = vadd.f32 1.0, %v2242_v62  ;;  %2265 = vrcp.f32 %v312_v6  ;;  %v1951_v49 = vmul.f32 -1.442695, %v479_v34  ;;  %v524_v50 = vadd.f32 %v522_v35, %v518_v37 }
  0x89   : > { %v2246_v8 = vpop.eup %2245  ;;  %v357_v13 = vadd.f32 1.0, %v2244_v5  ;;  %2267 = vrcp.f32 %v355_v9  ;;  %v568_v51 = vstv %s3143_s17  ;;  %v1952_v53 = vmul.f32 -1.442695, %v480_v40  ;;  %s3227_s17 = sld [smem:[#allocation7 + $0xa]] }
  0x8a   : > { %v2248_v12 = vpop.eup %2247  ;;  %v358_v17 = vadd.f32 1.0, %v2246_v8  ;;  %2269 = vrcp.f32 %v356_v11  ;;  %v525_v54 = vadd.f32 %v522_v35, %v519_v41  ;;  %v526_v56 = vadd.f32 %v522_v35, %v520_v43 }
  0x8b   : > { %v2250_v16 = vpop.eup %2249  ;;  %v401_v24 = vadd.f32 1.0, %v2248_v12  ;;  %2271 = vrcp.f32 %v357_v13  ;;  %v1956_v57 = vmul.f32 -1.442695, %v523_v44  ;;  %v569_v60 = vadd.f32 %v568_v51, %v563_v47 }
  0x8c   : > { %v2252_v20 = vpop.eup %2251  ;;  %v402_v26 = vadd.f32 1.0, %v2250_v16  ;;  %2273 = vrcp.f32 %v358_v17  ;;  %v1957_v62 = vmul.f32 -1.442695, %v524_v50  ;;  %v564_v63 = vmul.f32 %v562_v38, %v3109_v1 }
  0x8d   : > { %v2254_v25 = vpop.eup %2253  ;;  %v403_v30 = vadd.f32 1.0, %v2252_v20  ;;  %2275 = vpow2.f32 %v1944_v18  ;;  %v1958_v5 = vmul.f32 -1.442695, %v525_v54  ;;  %v565_v6 = vmul.f32 %v562_v38, %v3112_v2 }
  0x8e   : > { %v2256_v29 = vpop.eup %2255  ;;  %v404_v36 = vadd.f32 1.0, %v2254_v25  ;;  %2277 = vrcp.f32 %v401_v24  ;;  %v608_v7 = vstv %s3155_s11  ;;  %v322_v9 = vstv %s3147_s30  ;;  %s3229_s30 = sld [smem:[#allocation10 + $0x7]] }
  0x8f   : > { %2279 = vrcp.f32 %v402_v26  ;;  %v447_v39 = vadd.f32 1.0, %v2256_v29  ;;  %v2258_v45 = vpop.eup %2257  ;;  %v1959_v10 = vmul.f32 -1.442695, %v526_v56  ;;  %v566_v11 = vmul.f32 %v562_v38, %v3115_v3  ;;  %s3240_s11 = sld [smem:[#allocation10 + $0x8]] }
  0x90   : > { %2281 = vrcp.f32 %v403_v30  ;;  %v448_v59 = vadd.f32 1.0, %v2258_v45  ;;  %v368_v13 = vstv %s3150_s25  ;;  %v3177_v14 = vstv %s3157_s13  ;;  %s3237_s25 = sld [smem:[#allocation8 + $0xa]] }
  0x91   : > { %2283 = vpow2.f32 %v1945_v27  ;;  %v1963_v15 = vmul.f32 -1.442695, %v569_v60  ;;  %v3182_v17 = vstv %s3160_s14  ;;  %v570_v18 = vadd.f32 %v568_v51, %v564_v63  ;;  %s3259_s13 = sld [smem:[#allocation7 + $0xb]] }
  0x92   : > { %v2260_v48 = vpop.eup %2259  ;;  %2285 = vrcp.f32 %v404_v36  ;;  %v609_v19 = vmul.f32 %v608_v7, %v3106_v0  ;;  %v571_v21 = vadd.f32 %v568_v51, %v565_v6  ;;  %v610_v22 = vmul.f32 %v608_v7, %v3109_v1  ;;  %s3266_s14 = sld [smem:[#allocation8 + $0xb]] }
  0x93   : > { %v2262_v52 = vpop.eup %2261  ;;  %2287 = vrcp.f32 %v447_v39  ;;  %v614_v23 = vstv %s3166_s24  ;;  %v3190_v25 = vstv %s3163_s15  ;;  %v3193_v26 = vstv %s3168_s27  ;;  %s3269_s15 = sld [smem:[#allocation7 + $0xc]] }
  0x94   : > { %v2264_v55 = vpop.eup %2263  ;;  %2289 = vpow2.f32 %v1949_v42  ;;  %v572_v27 = vadd.f32 %v568_v51, %v566_v11  ;;  %v323_v29 = vmul.f32 %v2260_v48, %v322_v9  ;;  %v324_v30 = vmul.f32 %v2262_v52, %v322_v9  ;;  %s3276_s24 = sld [smem:[#allocation8 + $0xc]] }
  0x95   : > { %v2266_v58 = vpop.eup %2265  ;;  %2291 = vpow2.f32 %v1950_v46  ;;  %v1964_v35 = vmul.f32 -1.442695, %v570_v18  ;;  %v615_v36 = vadd.f32 %v614_v23, %v609_v19  ;;  %v325_v38 = vmul.f32 %v2264_v55, %v322_v9  ;;  %s3279_s27 = sld [smem:[#allocation7 + $0xd]] }
  0x96   : > { %v2268_v61 = vpop.eup %2267  ;;  %2293 = vpow2.f32 %v1951_v49  ;;  %v1965_v40 = vmul.f32 -1.442695, %v571_v21  ;;  %v616_v41 = vadd.f32 %v614_v23, %v610_v22  ;;  %v326_v43 = vmul.f32 %v2266_v58, %v322_v9 }
  0x97   : > { %v2270_v4 = vpop.eup %2269  ;;  %2295 = vpow2.f32 %v1952_v53  ;;  %v369_v33 = vmul.f32 %v2268_v61, %v368_v13  ;;  %v1966_v45 = vmul.f32 -1.442695, %v572_v27  ;;  %v611_v46 = vmul.f32 %v608_v7, %v3112_v2 }
  0x98   : > { %v2272_v8 = vpop.eup %2271  ;;  %2297 = vpow2.f32 %v1956_v57  ;;  %v370_v34 = vmul.f32 %v2270_v4, %v368_v13  ;;  %v3205_v49 = vstv %s3179_s7  ;;  %v612_v50 = vmul.f32 %v608_v7, %v3115_v3  ;;  %s3292_s7 = sld [smem:[#allocation8 + $0xd]] }
  0x99   : > { %v2274_v12 = vpop.eup %2273  ;;  %2299 = vrcp.f32 %v448_v59  ;;  %v371_v39 = vmul.f32 %v2272_v8, %v368_v13  ;;  %v373_v52 = vadd.f32 %v369_v33, %v323_v29  ;;  %v1970_v54 = vmul.f32 -1.442695, %v615_v36 }
  0x9a   : > { %v2276_v16 = vpop.eup %2275  ;;  %2301 = vpow2.f32 %v1957_v62  ;;  %v372_v44 = vmul.f32 %v2274_v12, %v368_v13  ;;  %v3208_v53 = vadd.f32 %v370_v34, %v324_v30  ;;  %v1971_v57 = vmul.f32 -1.442695, %v616_v41 }
  0x9b   : > { %v2278_v20 = vpop.eup %2277  ;;  %2303 = vpow2.f32 %v1958_v5  ;;  %v449_v31 = vadd.f32 1.0, %v2276_v16  ;;  %v3210_v56 = vadd.f32 %v371_v39, %v325_v38  ;;  %v654_v58 = vstv %s3187_s8  ;;  %s3304_s8 = sld [smem:[#allocation10 + $0x9]] }
  0x9c   : > { %v2280_v24 = vpop.eup %2279  ;;  %2305 = vpow2.f32 %v1959_v10  ;;  %v3213_v60 = vadd.f32 %v372_v44, %v326_v43  ;;  %v617_v62 = vadd.f32 %v614_v23, %v611_v46  ;;  %v415_v4 = vmul.f32 %v2278_v20, %v3177_v14 }
  0x9d   : > { %v2282_v28 = vpop.eup %2281  ;;  %2307 = vpow2.f32 %v1963_v15  ;;  %v618_v6 = vadd.f32 %v614_v23, %v612_v50  ;;  %v416_v8 = vmul.f32 %v2280_v24, %v3177_v14  ;;  %v655_v10 = vmul.f32 %v654_v58, %v3106_v0 }
  0x9e   : > { %v2284_v32 = vpop.eup %2283  ;;  %2309 = vrcp.f32 %v449_v31  ;;  %v656_v13 = vmul.f32 %v654_v58, %v3109_v1  ;;  %v660_v15 = vstv %s3197_s6  ;;  %v417_v18 = vmul.f32 %v2282_v28, %v3177_v14  ;;  %s3321_s6 = sld [smem:[#allocation10 + $0xa]] }
  0x9f   : > { %v3195_v37 = vpop.eup %2285  ;;  %v450_v48 = vadd.f32 1.0, %v2284_v32  ;;  %2311 = vpow2.f32 %v1964_v35  ;;  %v700_v20 = vstv %s3202_s9  ;;  %v419_v22 = vadd.f32 %v415_v4, %v373_v52  ;;  %s3328_s9 = sld [smem:[#allocation10 + $0xb]] }
  0xa0   : > { %v3199_v42 = vpop.eup %2287  ;;  %2313 = vpow2.f32 %v1965_v40  ;;  %v1972_v23 = vmul.f32 -1.442695, %v617_v62  ;;  %v657_v24 = vmul.f32 %v654_v58, %v3112_v2  ;;  %v658_v30 = vmul.f32 %v654_v58, %v3115_v3 }
  0xa1   : > { %v2290_v47 = vpop.eup %2289  ;;  %2315 = vpow2.f32 %v1966_v45  ;;  %v661_v31 = vadd.f32 %v660_v15, %v655_v10  ;;  %v662_v33 = vadd.f32 %v660_v15, %v656_v13  ;;  %v701_v28 = vmul.f32 %v700_v20, %v3106_v0 }
  0xa2   : > { %v2292_v51 = vpop.eup %2291  ;;  %v493_v61 = vadd.f32 1.0, %v2290_v47  ;;  %2317 = vrcp.f32 %v450_v48  ;;  %v702_v35 = vmul.f32 %v700_v20, %v3109_v1  ;;  %v706_v36 = vstv %s3215_s10  ;;  %s3334_s10 = sld [smem:[#allocation10 + $0xc]] }
  0xa3   : > { %v2294_v55 = vpop.eup %2293  ;;  %v494_v5 = vadd.f32 1.0, %v2292_v51  ;;  %2319 = vpow2.f32 %v1970_v54  ;;  %v418_v38 = vmul.f32 %v3195_v37, %v3177_v14  ;;  %v663_v40 = vadd.f32 %v660_v15, %v657_v24 }
  0xa4   : > { %v2296_v59 = vpop.eup %2295  ;;  %v495_v9 = vadd.f32 1.0, %v2294_v55  ;;  %2321 = vpow2.f32 %v1971_v57  ;;  %v1973_v43 = vmul.f32 -1.442695, %v618_v6  ;;  %v664_v44 = vadd.f32 %v660_v15, %v658_v30 }
  0xa5   : > { %v2298_v63 = vpop.eup %2297  ;;  %v496_v12 = vadd.f32 1.0, %v2296_v59  ;;  %2323 = vrcp.f32 %v493_v61  ;;  %v703_v45 = vmul.f32 %v700_v20, %v3112_v2  ;;  %v1977_v47 = vmul.f32 -1.442695, %v661_v31 }
  0xa6   : > { %v2300_v7 = vpop.eup %2299  ;;  %v539_v19 = vadd.f32 1.0, %v2298_v63  ;;  %2325 = vrcp.f32 %v494_v5  ;;  %v704_v48 = vmul.f32 %v700_v20, %v3115_v3  ;;  %v707_v50 = vadd.f32 %v706_v36, %v701_v28 }
  0xa7   : > { %v2302_v11 = vpop.eup %2301  ;;  %2327 = vrcp.f32 %v495_v9  ;;  %v420_v14 = vadd.f32 %v416_v8, %v3208_v53  ;;  %v1978_v37 = vmul.f32 -1.442695, %v662_v33  ;;  %v708_v52 = vadd.f32 %v706_v36, %v702_v35 }
  0xa8   : > { %v2304_v16 = vpop.eup %2303  ;;  %v540_v29 = vadd.f32 1.0, %v2302_v11  ;;  %2329 = vrcp.f32 %v496_v12  ;;  %v421_v55 = vadd.f32 %v417_v18, %v3210_v56  ;;  %v461_v57 = vmul.f32 %v3199_v42, %v3182_v17 }
  0xa9   : > { %v2306_v21 = vpop.eup %2305  ;;  %v541_v32 = vadd.f32 1.0, %v2304_v16  ;;  %2331 = vrcp.f32 %v539_v19  ;;  %v1979_v58 = vmul.f32 -1.442695, %v663_v40  ;;  %v462_v61 = vmul.f32 %v2300_v7, %v3182_v17 }
  0xaa   : > { %v2308_v27 = vpop.eup %2307  ;;  %v542_v34 = vadd.f32 1.0, %v2306_v21  ;;  %2333 = vpow2.f32 %v1972_v23  ;;  %v1980_v53 = vmul.f32 -1.442695, %v664_v44  ;;  %v709_v62 = vadd.f32 %v706_v36, %v703_v45 }
  0xab   : > { %v585_v39 = vadd.f32 1.0, %v2308_v27  ;;  %v2310_v41 = vpop.eup %2309  ;;  %2335 = vrcp.f32 %v540_v29  ;;  %v710_v4 = vadd.f32 %v706_v36, %v704_v48  ;;  %v1984_v5 = vmul.f32 -1.442695, %v707_v50 }
  0xac   : > { %v2312_v46 = vpop.eup %2311  ;;  %2337 = vrcp.f32 %v541_v32  ;;  %v746_v6 = vstv %s3227_s17  ;;  %v422_v56 = vadd.f32 %v418_v38, %v3213_v60  ;;  %v3249_v9 = vstv %s3229_s30  ;;  %s3337_s17 = sld [smem:[#allocation7 + $0xe]] }
  0xad   : > { %v2314_v51 = vpop.eup %2313  ;;  %2339 = vrcp.f32 %v542_v34  ;;  %v1985_v42 = vmul.f32 -1.442695, %v708_v52  ;;  %v463_v11 = vmul.f32 %v2310_v41, %v3182_v17  ;;  %v465_v7 = vadd.f32 %v461_v57, %v419_v22  ;;  %s3345_s30 = sld [smem:[#allocation10 + $0xd]] }
  0xae   : > { %v2316_v54 = vpop.eup %2315  ;;  %2341 = vrcp.f32 %v585_v39  ;;  %v586_v12 = vadd.f32 1.0, %v2312_v46  ;;  %v466_v15 = vadd.f32 %v462_v61, %v420_v14  ;;  %v1986_v16 = vmul.f32 -1.442695, %v709_v62 }
  0xaf   : > { %v2318_v59 = vpop.eup %2317  ;;  %2343 = vpow2.f32 %v1973_v43  ;;  %v747_v18 = vmul.f32 %v746_v6, %v3106_v0  ;;  %v1987_v60 = vmul.f32 -1.442695, %v710_v4  ;;  %v748_v20 = vmul.f32 %v746_v6, %v3109_v1 }
  0xb0   : > { %v2320_v63 = vpop.eup %2319  ;;  %2345 = vpow2.f32 %v1977_v47  ;;  %v752_v21 = vstv %s3237_s25  ;;  %v587_v24 = vadd.f32 1.0, %v2314_v51  ;;  %v3256_v27 = vstv %s3240_s11  ;;  %s3349_s25 = sld [smem:[#allocation8 + $0xe]] }
  0xb1   : > { %v2322_v8 = vpop.eup %2321  ;;  %2347 = vpow2.f32 %v1978_v37  ;;  %v749_v22 = vmul.f32 %v746_v6, %v3112_v2  ;;  %v464_v30 = vmul.f32 %v2318_v59, %v3182_v17  ;;  %v467_v31 = vadd.f32 %v463_v11, %v421_v55  ;;  %s3354_s11 = sld [smem:[#allocation7 + $0xf]] }
  0xb2   : > { %v2324_v10 = vpop.eup %2323  ;;  %2349 = vpow2.f32 %v1979_v58  ;;  %v750_v32 = vmul.f32 %v746_v6, %v3115_v3  ;;  %v588_v34 = vadd.f32 1.0, %v2316_v54  ;;  %v753_v35 = vadd.f32 %v752_v21, %v747_v18 }
  0xb3   : > { %v2326_v13 = vpop.eup %2325  ;;  %2351 = vpow2.f32 %v1980_v53  ;;  %v507_v28 = vmul.f32 %v2324_v10, %v3190_v25  ;;  %v631_v39 = vadd.f32 1.0, %v2320_v63  ;;  %v754_v40 = vadd.f32 %v752_v21, %v748_v20 }
  0xb4   : > { %v2328_v19 = vpop.eup %2327  ;;  %2353 = vpow2.f32 %v1984_v5  ;;  %v508_v38 = vmul.f32 %v2326_v13, %v3190_v25  ;;  %v632_v17 = vadd.f32 1.0, %v2322_v8  ;;  %v755_v44 = vadd.f32 %v752_v21, %v749_v22 }
  0xb5   : > { %v2330_v23 = vpop.eup %2329  ;;  %2355 = vpow2.f32 %v1985_v42  ;;  %v509_v43 = vmul.f32 %v2328_v19, %v3190_v25  ;;  %v468_v46 = vadd.f32 %v464_v30, %v422_v56  ;;  %v756_v50 = vadd.f32 %v752_v21, %v750_v32 }
  0xb6   : > { %v2332_v29 = vpop.eup %2331  ;;  %2357 = vrcp.f32 %v586_v12  ;;  %v510_v47 = vmul.f32 %v2330_v23, %v3190_v25  ;;  %v511_v14 = vadd.f32 %v507_v28, %v465_v7  ;;  %v1991_v52 = vmul.f32 -1.442695, %v753_v35 }
  0xb7   : > { %v2334_v33 = vpop.eup %2333  ;;  %2359 = vpow2.f32 %v1986_v16  ;;  %v553_v37 = vmul.f32 %v2332_v29, %v3193_v26  ;;  %v512_v55 = vadd.f32 %v508_v38, %v466_v15  ;;  %v1992_v58 = vmul.f32 -1.442695, %v754_v40 }
  0xb8   : > { %v2336_v36 = vpop.eup %2335  ;;  %2361 = vpow2.f32 %v1987_v60  ;;  %v633_v48 = vadd.f32 1.0, %v2334_v33  ;;  %v513_v25 = vadd.f32 %v509_v43, %v467_v31  ;;  %v1993_v61 = vmul.f32 -1.442695, %v755_v44 }
  0xb9   : > { %v2338_v41 = vpop.eup %2337  ;;  %2363 = vrcp.f32 %v587_v24  ;;  %v554_v57 = vmul.f32 %v2336_v36, %v3193_v26  ;;  %v792_v53 = vstv %s3259_s13  ;;  %v514_v63 = vadd.f32 %v510_v47, %v468_v46  ;;  %s3369_s13 = sld [smem:[#allocation8 + $0xf]] }
  0xba   : > { %v2340_v45 = vpop.eup %2339  ;;  %2365 = vrcp.f32 %v588_v34  ;;  %v555_v4 = vmul.f32 %v2338_v41, %v3193_v26  ;;  %v1994_v5 = vmul.f32 -1.442695, %v756_v50  ;;  %v3282_v56 = vadd.f32 %v553_v37, %v511_v14 }
  0xbb   : > { %v3271_v51 = vpop.eup %2341  ;;  %2367 = vrcp.f32 %v631_v39  ;;  %v556_v8 = vmul.f32 %v2340_v45, %v3193_v26  ;;  %v3284_v11 = vadd.f32 %v554_v57, %v512_v55  ;;  %v793_v12 = vmul.f32 %v792_v53, %v3106_v0 }
  0xbc   : > { %v2344_v54 = vpop.eup %2343  ;;  %2369 = vrcp.f32 %v632_v17  ;;  %v794_v16 = vmul.f32 %v792_v53, %v3109_v1  ;;  %v798_v18 = vstv %s3266_s14  ;;  %v3289_v26 = vadd.f32 %v555_v4, %v513_v25  ;;  %s3390_s14 = sld [smem:[#allocation7 + $0x10]] }
  0xbd   : > { %v2346_v59 = vpop.eup %2345  ;;  %2371 = vrcp.f32 %v633_v48  ;;  %v634_v42 = vadd.f32 1.0, %v2344_v54  ;;  %v838_v20 = vstv %s3269_s15  ;;  %v3294_v23 = vadd.f32 %v556_v8, %v514_v63  ;;  %s3405_s15 = sld [smem:[#allocation8 + $0x10]] }
  0xbe   : > { %v2348_v62 = vpop.eup %2347  ;;  %2373 = vpow2.f32 %v1991_v52  ;;  %v677_v7 = vadd.f32 1.0, %v2346_v59  ;;  %v795_v22 = vmul.f32 %v792_v53, %v3112_v2  ;;  %v796_v31 = vmul.f32 %v792_v53, %v3115_v3 }
  0xbf   : > { %v2350_v6 = vpop.eup %2349  ;;  %2375 = vpow2.f32 %v1992_v58  ;;  %v678_v15 = vadd.f32 1.0, %v2348_v62  ;;  %v799_v32 = vadd.f32 %v798_v18, %v793_v12  ;;  %v800_v34 = vadd.f32 %v798_v18, %v794_v16 }
  0xc0   : > { %v2352_v10 = vpop.eup %2351  ;;  %2377 = vpow2.f32 %v1993_v61  ;;  %v679_v60 = vadd.f32 1.0, %v2350_v6  ;;  %v839_v35 = vmul.f32 %v838_v20, %v3106_v0  ;;  %v840_v38 = vmul.f32 %v838_v20, %v3109_v1 }
  0xc1   : > { %v2354_v13 = vpop.eup %2353  ;;  %2379 = vpow2.f32 %v1994_v5  ;;  %v680_v24 = vadd.f32 1.0, %v2352_v10  ;;  %v844_v39 = vstv %s3276_s24  ;;  %v3302_v40 = vstv %s3279_s27  ;;  %s3408_s24 = sld [smem:[#allocation7 + $0x11]] }
  0xc2   : > { %v2356_v19 = vpop.eup %2355  ;;  %2381 = vrcp.f32 %v634_v42  ;;  %v723_v30 = vadd.f32 1.0, %v2354_v13  ;;  %v801_v43 = vadd.f32 %v798_v18, %v795_v22  ;;  %v841_v17 = vmul.f32 %v838_v20, %v3112_v2  ;;  %s3410_s27 = sld [smem:[#allocation10 + $0xe]] }
  0xc3   : > { %v2358_v21 = vpop.eup %2357  ;;  %2383 = vrcp.f32 %v677_v7  ;;  %v724_v28 = vadd.f32 1.0, %v2356_v19  ;;  %v802_v46 = vadd.f32 %v798_v18, %v796_v31  ;;  %v842_v47 = vmul.f32 %v838_v20, %v3115_v3 }
  0xc4   : > { %v2360_v29 = vpop.eup %2359  ;;  %2385 = vrcp.f32 %v678_v15  ;;  %v1998_v50 = vmul.f32 -1.442695, %v799_v32  ;;  %v845_v14 = vadd.f32 %v844_v39, %v839_v35  ;;  %v885_v37 = vmul.f32 %v3302_v40, %v3106_v0 }
  0xc5   : > { %v2362_v33 = vpop.eup %2361  ;;  %2387 = vrcp.f32 %v679_v60  ;;  %v725_v41 = vadd.f32 1.0, %v2360_v29  ;;  %v599_v54 = vmul.f32 %v3271_v51, %v3205_v49  ;;  %v1999_v55 = vmul.f32 -1.442695, %v800_v34 }
  0xc6   : > { %v2364_v36 = vpop.eup %2363  ;;  %2389 = vrcp.f32 %v680_v24  ;;  %v726_v45 = vadd.f32 1.0, %v2362_v33  ;;  %v846_v57 = vadd.f32 %v844_v39, %v840_v38  ;;  %v3313_v58 = vstv %s3292_s7  ;;  %s3417_s7 = sld [smem:[#allocation8 + $0x11]] }
  0xc7   : > { %v2366_v44 = vpop.eup %2365  ;;  %2391 = vrcp.f32 %v723_v30  ;;  %v600_v25 = vmul.f32 %v2358_v21, %v3205_v49  ;;  %v2000_v61 = vmul.f32 -1.442695, %v801_v43  ;;  %v847_v53 = vadd.f32 %v844_v39, %v841_v17 }
  0xc8   : > { %v2368_v48 = vpop.eup %2367  ;;  %2393 = vrcp.f32 %v724_v28  ;;  %v601_v63 = vmul.f32 %v2364_v36, %v3205_v49  ;;  %v2001_v0 = vmul.f32 -1.442695, %v802_v46  ;;  %v848_v4 = vadd.f32 %v844_v39, %v842_v47 }
  0xc9   : > { %v2370_v52 = vpop.eup %2369  ;;  %2395 = vrcp.f32 %v725_v41  ;;  %v602_v51 = vmul.f32 %v2366_v44, %v3205_v49  ;;  %v2005_v6 = vmul.f32 -1.442695, %v845_v14  ;;  %v891_v8 = vadd.f32 %v3313_v58, %v885_v37 }
  0xca   : > { %v2372_v59 = vpop.eup %2371  ;;  %2397 = vrcp.f32 %v726_v45  ;;  %v603_v10 = vadd.f32 %v599_v54, %v3282_v56  ;;  %v645_v7 = vmul.f32 %v2368_v48, %v3249_v9  ;;  %v2006_v12 = vmul.f32 -1.442695, %v846_v57 }
  0xcb   : > { %v2374_v62 = vpop.eup %2373  ;;  %2399 = vpow2.f32 %v1998_v50  ;;  %v604_v15 = vadd.f32 %v600_v25, %v3284_v11  ;;  %v3325_v16 = vstv %s3304_s8  ;;  %v2007_v49 = vmul.f32 -1.442695, %v847_v53  ;;  %s3430_s8 = sld [smem:[#allocation10 + $0xf]] }
  0xcc   : > { %v2376_v5 = vpop.eup %2375  ;;  %2401 = vpow2.f32 %v1999_v55  ;;  %v605_v19 = vadd.f32 %v601_v63, %v3289_v26  ;;  %v2008_v56 = vmul.f32 -1.442695, %v848_v4  ;;  %v886_v60 = vmul.f32 %v3302_v40, %v3109_v1 }
  0xcd   : > { %v2378_v42 = vpop.eup %2377  ;;  %2403 = vpow2.f32 %v2000_v61  ;;  %v606_v21 = vadd.f32 %v602_v51, %v3294_v23  ;;  %v646_v24 = vmul.f32 %v2370_v52, %v3249_v9  ;;  %v2012_v11 = vmul.f32 -1.442695, %v891_v8 }
  0xce   : > { %v2380_v13 = vpop.eup %2379  ;;  %2405 = vpow2.f32 %v2001_v0  ;;  %v647_v29 = vmul.f32 %v2372_v59, %v3249_v9  ;;  %v649_v26 = vadd.f32 %v645_v7, %v603_v10  ;;  %v769_v30 = vadd.f32 1.0, %v2374_v62  ;;  %v3381_v10 = vld [vmem:[%s3091_s18] sm:$0xff] }
  0xcf   : > { %v2382_v18 = vpop.eup %2381  ;;  %2407 = vpow2.f32 %v2005_v6  ;;  %v770_v32 = vadd.f32 1.0, %v2376_v5  ;;  %v887_v1 = vmul.f32 %v3302_v40, %v3112_v2  ;;  %v888_v23 = vmul.f32 %v3302_v40, %v3115_v3 }
  0xd0   : > { %v2384_v20 = vpop.eup %2383  ;;  %2409 = vpow2.f32 %v2006_v12  ;;  %v648_v28 = vmul.f32 %v2382_v18, %v3249_v9  ;;  %v771_v34 = vadd.f32 1.0, %v2378_v42  ;;  %v892_v35 = vadd.f32 %v3313_v58, %v886_v60 }
  0xd1   : > { %v2386_v22 = vpop.eup %2385  ;;  %2411 = vpow2.f32 %v2007_v49  ;;  %v650_v38 = vadd.f32 %v646_v24, %v604_v15  ;;  %v691_v39 = vmul.f32 %v2384_v20, %v3256_v27  ;;  %v651_v3 = vadd.f32 %v647_v29, %v605_v19  ;;  %v3385_v15 = vld [vmem:[%s3091_s18 + $0x8] sm:$0xff]  ;;  %v3395_v20 = vld [vmem:[%s3091_s18 + $0x10] sm:$0xff]  ;;  %v3401_v29 = vld [vmem:[%s3091_s18 + $0x18] sm:$0xff] }
  0xd2   : > { %v2388_v31 = vpop.eup %2387  ;;  %2413 = vpow2.f32 %v2008_v56  ;;  %v692_v41 = vmul.f32 %v2386_v22, %v3256_v27  ;;  %v772_v40 = vadd.f32 1.0, %v2380_v13  ;;  %v3352_v9 = vstv %s3321_s6  ;;  %s3435_s6 = sld [smem:[#allocation7 + $0x12]] }
  0xd3   : > { %v2390_v33 = vpop.eup %2389  ;;  %2415 = vpow2.f32 %v2012_v11  ;;  %v693_v43 = vmul.f32 %v2388_v31, %v3256_v27  ;;  %v893_v17 = vadd.f32 %v3313_v58, %v887_v1  ;;  %v894_v44 = vadd.f32 %v3313_v58, %v888_v23 }
  0xd4   : > { %v2392_v36 = vpop.eup %2391  ;;  %2417 = vrcp.f32 %v769_v30  ;;  %v652_v46 = vadd.f32 %v648_v28, %v606_v21  ;;  %v694_v47 = vmul.f32 %v2390_v33, %v3256_v27  ;;  %v2013_v48 = vmul.f32 -1.442695, %v892_v35 }
  0xd5   : > { %v2394_v2 = vpop.eup %2393  ;;  %2419 = vrcp.f32 %v770_v32  ;;  %v695_v14 = vadd.f32 %v691_v39, %v649_v26  ;;  %v696_v37 = vadd.f32 %v692_v41, %v650_v38  ;;  %v737_v52 = vmul.f32 %v2392_v36, %v3325_v16 }
  0xd6   : > { %v2396_v45 = vpop.eup %2395  ;;  %2421 = vrcp.f32 %v771_v34  ;;  %v738_v54 = vmul.f32 %v2394_v2, %v3325_v16  ;;  %v3363_v57 = vstv %s3328_s9  ;;  %v3366_v59 = vstv %s3334_s10  ;;  %s3437_s9 = sld [smem:[#allocation10 + $0x10]] }
  0xd7   : > { %v2398_v50 = vpop.eup %2397  ;;  %2423 = vrcp.f32 %v772_v40  ;;  %v930_v58 = vstv %s3337_s17  ;;  %v697_v25 = vadd.f32 %v693_v43, %v651_v3  ;;  %v739_v61 = vmul.f32 %v2396_v45, %v3325_v16  ;;  %s3442_s10 = sld [smem:[#allocation8 + $0x12]] }
  0xd8   : > { %v2400_v55 = vpop.eup %2399  ;;  %v2014_v53 = vmul.f32 -1.442695, %v893_v17  ;;  %v2015_v62 = vmul.f32 -1.442695, %v894_v44  ;;  %v698_v0 = vadd.f32 %v694_v47, %v652_v46  ;;  %v740_v4 = vmul.f32 %v2398_v50, %v3325_v16  ;;  %s3446_s17 = sld [smem:[#allocation7 + $0x13]] }
  0xd9   : > { %v2402_v27 = vpop.eup %2401  ;;  %2425 = vpow2.f32 %v2013_v48  ;;  %v3374_v5 = vstv %s3345_s30  ;;  %v3376_v6 = vadd.f32 %v737_v52, %v695_v14  ;;  %v3378_v8 = vadd.f32 %v738_v54, %v696_v37  ;;  %s3463_s30 = sld [smem:[#allocation8 + $0x13]] }
  0xda   : > { %v2404_v63 = vpop.eup %2403  ;;  %v815_v42 = vadd.f32 1.0, %v2400_v55  ;;  %v931_v7 = vmul.f32 %v3381_v10, %v930_v58  ;;  %v816_v13 = vadd.f32 1.0, %v2402_v27  ;;  %v932_v16 = vmul.f32 %v3385_v15, %v930_v58 }
  0xdb   : > { %v2406_v51 = vpop.eup %2405  ;;  %v936_v49 = vstv %s3349_s25  ;;  %v976_v18 = vstv %s3354_s11  ;;  %v3392_v56 = vadd.f32 %v739_v61, %v697_v25  ;;  %v817_v60 = vadd.f32 1.0, %v2404_v63  ;;  %s3488_s25 = sld [smem:[#allocation7 + $0x14]] }
  0xdc   : > { %v2408_v12 = vpop.eup %2407  ;;  %2427 = vpow2.f32 %v2014_v53  ;;  %v933_v21 = vmul.f32 %v3395_v20, %v930_v58  ;;  %v3398_v11 = vadd.f32 %v740_v4, %v698_v0  ;;  %v818_v22 = vadd.f32 1.0, %v2406_v51  ;;  %s3499_s11 = sld [smem:[#allocation8 + $0x14]] }
  0xdd   : > { %v2410_v19 = vpop.eup %2409  ;;  %2429 = vpow2.f32 %v2015_v62  ;;  %v934_v26 = vmul.f32 %v3401_v29, %v930_v58  ;;  %v861_v31 = vadd.f32 1.0, %v2408_v12  ;;  %v937_v32 = vadd.f32 %v936_v49, %v931_v7 }
  0xde   : > { %v2412_v24 = vpop.eup %2411  ;;  %2431 = vrcp.f32 %v815_v42  ;;  %v977_v1 = vmul.f32 %v3381_v10, %v976_v18  ;;  %v862_v33 = vadd.f32 1.0, %v2410_v19  ;;  %v938_v28 = vadd.f32 %v936_v49, %v932_v16 }
  0xdf   : > { %v2414_v30 = vpop.eup %2413  ;;  %2433 = vrcp.f32 %v816_v13  ;;  %v982_v34 = vstv %s3369_s13  ;;  %v863_v36 = vadd.f32 1.0, %v2412_v24  ;;  %v939_v38 = vadd.f32 %v936_v49, %v933_v21  ;;  %s3507_s13 = sld [smem:[#allocation10 + $0x11]] }
  0xe0   : > { %v2416_v23 = vpop.eup %2415  ;;  %2435 = vrcp.f32 %v817_v60  ;;  %v978_v39 = vmul.f32 %v3385_v15, %v976_v18  ;;  %v864_v2 = vadd.f32 1.0, %v2414_v30  ;;  %v940_v3 = vadd.f32 %v936_v49, %v934_v26 }
  0xe1   : > { %v2418_v35 = vpop.eup %2417  ;;  %2437 = vrcp.f32 %v818_v22  ;;  %v979_v40 = vmul.f32 %v3395_v20, %v976_v18  ;;  %v907_v17 = vadd.f32 1.0, %v2416_v23  ;;  %v980_v44 = vmul.f32 %v3401_v29, %v976_v18 }
  0xe2   : > { %v2420_v41 = vpop.eup %2419  ;;  %2439 = vrcp.f32 %v861_v31  ;;  %v983_v45 = vadd.f32 %v982_v34, %v977_v1  ;;  %v783_v46 = vmul.f32 %v2418_v35, %v3352_v9  ;;  %v2019_v47 = vmul.f32 -1.442695, %v937_v32 }
  0xe3   : > { %v2422_v43 = vpop.eup %2421  ;;  %2441 = vrcp.f32 %v862_v33  ;;  %v1022_v48 = vstv %s3390_s14  ;;  %v784_v14 = vmul.f32 %v2420_v41, %v3352_v9  ;;  %v2020_v37 = vmul.f32 -1.442695, %v938_v28  ;;  %s3512_s14 = sld [smem:[#allocation7 + $0x15]] }
  0xe4   : > { %v2424_v50 = vpop.eup %2423  ;;  %2443 = vrcp.f32 %v863_v36  ;;  %v984_v52 = vadd.f32 %v982_v34, %v978_v39  ;;  %v2021_v54 = vmul.f32 -1.442695, %v939_v38  ;;  %v2022_v55 = vmul.f32 -1.442695, %v940_v3 }
  0xe5   : > { %2445 = vrcp.f32 %v864_v2  ;;  %v985_v58 = vadd.f32 %v982_v34, %v979_v40  ;;  %v986_v25 = vadd.f32 %v982_v34, %v980_v44  ;;  %v2026_v61 = vmul.f32 -1.442695, %v983_v45 }
  0xe6   : > { %v2426_v27 = vpop.eup %2425  ;;  %2447 = vrcp.f32 %v907_v17  ;;  %v1023_v53 = vmul.f32 %v3381_v10, %v1022_v48  ;;  %v1024_v62 = vmul.f32 %v3385_v15, %v1022_v48  ;;  %v1028_v63 = vstv %s3405_s15  ;;  %s3519_s15 = sld [smem:[#allocation10 + $0x12]] }
  0xe7   : > { %2449 = vpow2.f32 %v2019_v47  ;;  %v1068_v0 = vstv %s3408_s24  ;;  %v3425_v4 = vstv %s3410_s27  ;;  %v2027_v51 = vmul.f32 -1.442695, %v984_v52  ;;  %s3527_s24 = sld [smem:[#allocation8 + $0x15]] }
  0xe8   : > { %2451 = vpow2.f32 %v2020_v37  ;;  %v1025_v42 = vmul.f32 %v3395_v20, %v1022_v48  ;;  %v908_v12 = vadd.f32 1.0, %v2426_v27  ;;  %v2028_v13 = vmul.f32 -1.442695, %v985_v58  ;;  %s3533_s27 = sld [smem:[#allocation7 + $0x16]] }
  0xe9   : > { %v2428_v7 = vpop.eup %2427  ;;  %2453 = vpow2.f32 %v2021_v54  ;;  %v1026_v16 = vmul.f32 %v3401_v29, %v1022_v48  ;;  %v2029_v18 = vmul.f32 -1.442695, %v986_v25  ;;  %v1029_v19 = vadd.f32 %v1028_v63, %v1023_v53 }
  0xea   : > { %v2430_v49 = vpop.eup %2429  ;;  %2455 = vpow2.f32 %v2022_v55  ;;  %v1069_v60 = vmul.f32 %v3381_v10, %v1068_v0  ;;  %v1030_v24 = vadd.f32 %v1028_v63, %v1024_v62  ;;  %v1070_v22 = vmul.f32 %v3385_v15, %v1068_v0 }
  0xeb   : > { %v2432_v21 = vpop.eup %2431  ;;  %2457 = vpow2.f32 %v2026_v61  ;;  %v1074_v26 = vstv %s3417_s7  ;;  %v785_v31 = vmul.f32 %v2422_v43, %v3352_v9  ;;  %v909_v32 = vadd.f32 1.0, %v2428_v7  ;;  %s3553_s7 = sld [smem:[#allocation8 + $0x16]] }
  0xec   : > { %v2434_v30 = vpop.eup %2433  ;;  %2459 = vpow2.f32 %v2027_v51  ;;  %v1031_v1 = vadd.f32 %v1028_v63, %v1025_v42  ;;  %v910_v33 = vadd.f32 1.0, %v2430_v49  ;;  %v1032_v28 = vadd.f32 %v1028_v63, %v1026_v16 }
  0xed   : > { %v2436_v23 = vpop.eup %2435  ;;  %2461 = vpow2.f32 %v2028_v13  ;;  %v1071_v34 = vmul.f32 %v3395_v20, %v1068_v0  ;;  %v2033_v36 = vmul.f32 -1.442695, %v1029_v19  ;;  %v1072_v38 = vmul.f32 %v3401_v29, %v1068_v0 }
  0xee   : > { %v2438_v35 = vpop.eup %2437  ;;  %2463 = vpow2.f32 %v2029_v18  ;;  %v1075_v39 = vadd.f32 %v1074_v26, %v1069_v60  ;;  %v787_v2 = vadd.f32 %v783_v46, %v3376_v6  ;;  %v2034_v3 = vmul.f32 -1.442695, %v1030_v24 }
  0xef   : > { %v2440_v41 = vpop.eup %2439  ;;  %2465 = vrcp.f32 %v908_v12  ;;  %v1076_v40 = vadd.f32 %v1074_v26, %v1070_v22  ;;  %v786_v17 = vmul.f32 %v2424_v50, %v3352_v9  ;;  %v788_v44 = vadd.f32 %v784_v14, %v3378_v8 }
  0xf0   : > { %v2442_v43 = vpop.eup %2441  ;;  %2467 = vrcp.f32 %v909_v32  ;;  %v2035_v45 = vmul.f32 -1.442695, %v1031_v1  ;;  %v829_v48 = vmul.f32 %v2432_v21, %v3363_v57  ;;  %v2036_v6 = vmul.f32 -1.442695, %v1032_v28 }
  0xf1   : > { %v3448_v47 = vpop.eup %2443  ;;  %2469 = vrcp.f32 %v910_v33  ;;  %v1077_v46 = vadd.f32 %v1074_v26, %v1071_v34  ;;  %v830_v52 = vmul.f32 %v2434_v30, %v3363_v57  ;;  %v1078_v9 = vadd.f32 %v1074_v26, %v1072_v38 }
  0xf2   : > { %v3451_v37 = vpop.eup %2445  ;;  %2471 = vpow2.f32 %v2033_v36  ;;  %v2040_v8 = vmul.f32 -1.442695, %v1075_v39  ;;  %v789_v14 = vadd.f32 %v785_v31, %v3392_v56  ;;  %v831_v54 = vmul.f32 %v2436_v23, %v3363_v57 }
  0xf3   : > { %v3454_v50 = vpop.eup %2447  ;;  %2473 = vpow2.f32 %v2034_v3  ;;  %v2041_v55 = vmul.f32 -1.442695, %v1076_v40  ;;  %v790_v27 = vadd.f32 %v786_v17, %v3398_v11  ;;  %v3460_v25 = vstv %s3430_s8  ;;  %s3563_s8 = sld [smem:[#allocation7 + $0x17]] }
  0xf4   : > { %v2450_v58 = vpop.eup %2449  ;;  %2475 = vpow2.f32 %v2035_v45  ;;  %v1114_v61 = vstv %s3435_s6  ;;  %v833_v62 = vadd.f32 %v829_v48, %v787_v2  ;;  %v3466_v63 = vstv %s3437_s9  ;;  %s3577_s6 = sld [smem:[#allocation8 + $0x17]] }
  0xf5   : > { %v2452_v53 = vpop.eup %2451  ;;  %2477 = vpow2.f32 %v2036_v6  ;;  %v2042_v56 = vmul.f32 -1.442695, %v1077_v46  ;;  %v832_v51 = vmul.f32 %v2438_v35, %v3363_v57  ;;  %v3469_v42 = vadd.f32 %v830_v52, %v788_v44  ;;  %s3590_s9 = sld [smem:[#allocation7 + $0x18]] }
  0xf6   : > { %v2454_v0 = vpop.eup %2453  ;;  %2479 = vpow2.f32 %v2040_v8  ;;  %v2043_v11 = vmul.f32 -1.442695, %v1078_v9  ;;  %v3471_v12 = vadd.f32 %v831_v54, %v789_v14  ;;  %v953_v13 = vadd.f32 1.0, %v2450_v58 }
  0xf7   : > { %v2456_v7 = vpop.eup %2455  ;;  %2481 = vpow2.f32 %v2041_v55  ;;  %v1115_v16 = vmul.f32 %v3381_v10, %v1114_v61  ;;  %v954_v18 = vadd.f32 1.0, %v2452_v53  ;;  %v1116_v19 = vmul.f32 %v3385_v15, %v1114_v61 }
  0xf8   : > { %v2458_v49 = vpop.eup %2457  ;;  %v1120_v60 = vstv %s3442_s10  ;;  %v3477_v21 = vstv %s3446_s17  ;;  %v875_v57 = vmul.f32 %v2440_v41, %v3366_v59  ;;  %v955_v22 = vadd.f32 1.0, %v2454_v0  ;;  %s3606_s10 = sld [smem:[#allocation8 + $0x18]] }
  0xf9   : > { %v2460_v24 = vpop.eup %2459  ;;  %2483 = vpow2.f32 %v2042_v56  ;;  %v1117_v26 = vmul.f32 %v3395_v20, %v1114_v61  ;;  %v876_v31 = vmul.f32 %v2442_v43, %v3366_v59  ;;  %v956_v32 = vadd.f32 1.0, %v2456_v7  ;;  %s3615_s17 = sld [smem:[#allocation10 + $0x13]] }
  0xfa   : > { %v2462_v30 = vpop.eup %2461  ;;  %2485 = vpow2.f32 %v2043_v11  ;;  %v1118_v1 = vmul.f32 %v3401_v29, %v1114_v61  ;;  %v999_v33 = vadd.f32 1.0, %v2458_v49  ;;  %v1121_v28 = vadd.f32 %v1120_v60, %v1115_v16 }
  0xfb   : > { %v2464_v23 = vpop.eup %2463  ;;  %2487 = vrcp.f32 %v953_v13  ;;  %v1161_v34 = vmul.f32 %v3381_v10, %v3477_v21  ;;  %v1000_v36 = vadd.f32 1.0, %v2460_v24  ;;  %v1122_v38 = vadd.f32 %v1120_v60, %v1116_v19 }
  0xfc   : > { %v2466_v35 = vpop.eup %2465  ;;  %2489 = vrcp.f32 %v954_v18  ;;  %v3486_v39 = vstv %s3463_s30  ;;  %v1001_v2 = vadd.f32 1.0, %v2462_v30  ;;  %v1123_v3 = vadd.f32 %v1120_v60, %v1117_v26  ;;  %s3629_s30 = sld [smem:[#allocation10 + $0x14]] }
  0xfd   : > { %v2468_v41 = vpop.eup %2467  ;;  %2491 = vrcp.f32 %v955_v22  ;;  %v1162_v40 = vmul.f32 %v3385_v15, %v3477_v21  ;;  %v1002_v17 = vadd.f32 1.0, %v2464_v23  ;;  %v1124_v44 = vadd.f32 %v1120_v60, %v1118_v1 }
  0xfe   : > { %v2470_v43 = vpop.eup %2469  ;;  %2493 = vrcp.f32 %v956_v32  ;;  %v1163_v45 = vmul.f32 %v3395_v20, %v3477_v21  ;;  %v877_v6 = vmul.f32 %v3448_v47, %v3366_v59  ;;  %v2047_v46 = vmul.f32 -1.442695, %v1121_v28 }
  0xff   : > { %v2472_v48 = vpop.eup %2471  ;;  %2495 = vrcp.f32 %v999_v33  ;;  %v1167_v52 = vadd.f32 %v3486_v39, %v1161_v34  ;;  %v836_v8 = vadd.f32 %v832_v51, %v790_v27  ;;  %v878_v14 = vmul.f32 %v3451_v37, %v3366_v59 }
 0x100   : > { %v2474_v9 = vpop.eup %2473  ;;  %2497 = vrcp.f32 %v1000_v36  ;;  %v2048_v54 = vmul.f32 -1.442695, %v1122_v38  ;;  %v879_v58 = vadd.f32 %v875_v57, %v833_v62  ;;  %v2049_v61 = vmul.f32 -1.442695, %v1123_v3 }
 0x101   : > { %v2476_v55 = vpop.eup %2475  ;;  %2499 = vrcp.f32 %v1001_v2  ;;  %v1168_v53 = vadd.f32 %v3486_v39, %v1162_v40  ;;  %v921_v56 = vmul.f32 %v3454_v50, %v3374_v5  ;;  %v2050_v27 = vmul.f32 -1.442695, %v1124_v44 }
 0x102   : > { %v2478_v47 = vpop.eup %2477  ;;  %2501 = vrcp.f32 %v1002_v17  ;;  %v1169_v0 = vadd.f32 %v3486_v39, %v1163_v45  ;;  %v880_v37 = vadd.f32 %v876_v31, %v3469_v42  ;;  %v881_v51 = vadd.f32 %v877_v6, %v3471_v12 }
 0x103   : > { %v2480_v59 = vpop.eup %2479  ;;  %2503 = vpow2.f32 %v2047_v46  ;;  %v2054_v62 = vmul.f32 -1.442695, %v1167_v52  ;;  %v882_v7 = vadd.f32 %v878_v14, %v836_v8  ;;  %v1045_v13 = vadd.f32 1.0, %v2472_v48 }
 0x104   : > { %v2482_v11 = vpop.eup %2481  ;;  %2505 = vpow2.f32 %v2048_v54  ;;  %v1206_v16 = vstv %s3488_s25  ;;  %v922_v50 = vmul.f32 %v2466_v35, %v3374_v5  ;;  %v923_v49 = vmul.f32 %v2468_v41, %v3374_v5  ;;  %s3637_s25 = sld [smem:[#allocation7 + $0x19]] }
 0x105   : > { %2507 = vpow2.f32 %v2049_v61  ;;  %v2055_v18 = vmul.f32 -1.442695, %v1168_v53  ;;  %v3514_v12 = vadd.f32 %v921_v56, %v879_v58  ;;  %v1164_v19 = vmul.f32 %v3401_v29, %v3477_v21 }
 0x106   : > { %v2484_v42 = vpop.eup %2483  ;;  %2509 = vpow2.f32 %v2050_v27  ;;  %v2056_v60 = vmul.f32 -1.442695, %v1169_v0  ;;  %v924_v57 = vmul.f32 %v2470_v43, %v3374_v5  ;;  %v1046_v22 = vadd.f32 1.0, %v2474_v9 }
 0x107   : > { %v2486_v24 = vpop.eup %2485  ;;  %2511 = vpow2.f32 %v2054_v62  ;;  %v1207_v26 = vmul.f32 %v3381_v10, %v1206_v16  ;;  %v1047_v31 = vadd.f32 1.0, %v2476_v55  ;;  %v1208_v32 = vmul.f32 %v3385_v15, %v1206_v16 }
 0x108   : > { %v2488_v30 = vpop.eup %2487  ;;  %2513 = vrcp.f32 %v1045_v13  ;;  %v1212_v1 = vstv %s3499_s11  ;;  %v3524_v33 = vadd.f32 %v922_v50, %v880_v37  ;;  %v1048_v21 = vadd.f32 1.0, %v2478_v47  ;;  %s3658_s11 = sld [smem:[#allocation8 + $0x19]] }
 0x109   : > { %v2490_v23 = vpop.eup %2489  ;;  %2515 = vpow2.f32 %v2055_v18  ;;  %v1209_v28 = vmul.f32 %v3395_v20, %v1206_v16  ;;  %v1091_v34 = vadd.f32 1.0, %v2480_v59  ;;  %v1170_v35 = vadd.f32 %v3486_v39, %v1164_v19 }
 0x10a   : > { %v2492_v5 = vpop.eup %2491  ;;  %2517 = vpow2.f32 %v2056_v60  ;;  %v1210_v36 = vmul.f32 %v3401_v29, %v1206_v16  ;;  %v3531_v41 = vadd.f32 %v923_v49, %v881_v51  ;;  %v1092_v2 = vadd.f32 1.0, %v2482_v11 }
 0x10b   : > { %v2494_v38 = vpop.eup %2493  ;;  %2519 = vrcp.f32 %v1046_v22  ;;  %v1213_v3 = vadd.f32 %v1212_v1, %v1207_v26  ;;  %v1093_v43 = vadd.f32 1.0, %v2484_v42  ;;  %v3538_v17 = vstv %s3507_s13  ;;  %s3671_s13 = sld [smem:[#allocation7 + $0x1a]] }
 0x10c   : > { %v3535_v40 = vpop.eup %2495  ;;  %2521 = vrcp.f32 %v1047_v31  ;;  %v1214_v39 = vadd.f32 %v1212_v1, %v1208_v32  ;;  %v1094_v45 = vadd.f32 1.0, %v2486_v24  ;;  %v1215_v48 = vadd.f32 %v1212_v1, %v1209_v28 }
 0x10d   : > { %v3540_v44 = vpop.eup %2497  ;;  %2523 = vrcp.f32 %v1048_v21  ;;  %v1252_v6 = vstv %s3512_s14  ;;  %v967_v52 = vmul.f32 %v2488_v30, %v3425_v4  ;;  %v2057_v9 = vmul.f32 -1.442695, %v1170_v35  ;;  %s3675_s14 = sld [smem:[#allocation10 + $0x15]] }
 0x10e   : > { %v3543_v46 = vpop.eup %2499  ;;  %2525 = vrcp.f32 %v1091_v34  ;;  %v1216_v8 = vadd.f32 %v1212_v1, %v1210_v36  ;;  %v3548_v54 = vadd.f32 %v924_v57, %v882_v7  ;;  %v3551_v55 = vstv %s3519_s15  ;;  %s3689_s15 = sld [smem:[#allocation8 + $0x1a]] }
 0x10f   : > { %v3546_v14 = vpop.eup %2501  ;;  %2527 = vrcp.f32 %v1092_v2  ;;  %v2061_v58 = vmul.f32 -1.442695, %v1213_v3  ;;  %v968_v53 = vmul.f32 %v2490_v23, %v3425_v4  ;;  %v2062_v47 = vmul.f32 -1.442695, %v1214_v39 }
 0x110   : > { %v2504_v61 = vpop.eup %2503  ;;  %2529 = vrcp.f32 %v1093_v43  ;;  %v1253_v56 = vmul.f32 %v3381_v10, %v1252_v6  ;;  %v969_v0 = vmul.f32 %v2492_v5, %v3425_v4  ;;  %v2063_v59 = vmul.f32 -1.442695, %v1215_v48 }
 0x111   : > { %v2506_v27 = vpop.eup %2505  ;;  %2531 = vrcp.f32 %v1094_v45  ;;  %v1258_v37 = vstv %s3527_s24  ;;  %v3560_v62 = vadd.f32 %v967_v52, %v3514_v12  ;;  %v2064_v11 = vmul.f32 -1.442695, %v1216_v8  ;;  %s3693_s24 = sld [smem:[#allocation10 + $0x16]] }
 0x112   : > { %v2508_v51 = vpop.eup %2507  ;;  %2533 = vpow2.f32 %v2057_v9  ;;  %v1254_v7 = vmul.f32 %v3385_v15, %v1252_v6  ;;  %v3566_v16 = vmul.f32 %v2494_v38, %v3425_v4  ;;  %v1137_v50 = vadd.f32 1.0, %v2504_v61 }
 0x113   : > { %v2510_v13 = vpop.eup %2509  ;;  %2535 = vpow2.f32 %v2061_v58  ;;  %v1298_v49 = vstv %s3533_s27  ;;  %v1138_v42 = vadd.f32 1.0, %v2506_v27  ;;  %v1255_v19 = vmul.f32 %v3395_v20, %v1252_v6  ;;  %s3696_s27 = sld [smem:[#allocation10 + $0x17]] }
 0x114   : > { %v2512_v18 = vpop.eup %2511  ;;  %2537 = vpow2.f32 %v2062_v47  ;;  %v1259_v12 = vadd.f32 %v1258_v37, %v1253_v56  ;;  %v3573_v24 = vadd.f32 %v968_v53, %v3524_v33  ;;  %v1139_v57 = vadd.f32 1.0, %v2508_v51 }
 0x115   : > { %v3570_v60 = vpop.eup %2513  ;;  %2539 = vpow2.f32 %v2063_v59  ;;  %v1256_v4 = vmul.f32 %v3401_v29, %v1252_v6  ;;  %v1140_v26 = vadd.f32 1.0, %v2510_v13  ;;  %v1260_v30 = vadd.f32 %v1258_v37, %v1254_v7 }
 0x116   : > { %v2516_v22 = vpop.eup %2515  ;;  %2541 = vpow2.f32 %v2064_v11  ;;  %v1299_v31 = vmul.f32 %v3381_v10, %v1298_v49  ;;  %v1183_v1 = vadd.f32 1.0, %v2512_v18  ;;  %v1300_v23 = vmul.f32 %v3385_v15, %v1298_v49 }
 0x117   : > { %v2518_v32 = vpop.eup %2517  ;;  %2543 = vrcp.f32 %v1137_v50  ;;  %v1304_v33 = vstv %s3553_s7  ;;  %v1261_v28 = vadd.f32 %v1258_v37, %v1255_v19  ;;  %v2068_v5 = vmul.f32 -1.442695, %v1259_v12  ;;  %s3708_s7 = sld [smem:[#allocation7 + $0x1b]] }
 0x118   : > { %v3581_v21 = vpop.eup %2519  ;;  %2545 = vrcp.f32 %v1138_v42  ;;  %v1301_v34 = vmul.f32 %v3395_v20, %v1298_v49  ;;  %v1184_v36 = vadd.f32 1.0, %v2516_v22  ;;  %v1262_v38 = vadd.f32 %v1258_v37, %v1256_v4 }
 0x119   : > { %v3584_v35 = vpop.eup %2521  ;;  %2547 = vrcp.f32 %v1139_v57  ;;  %v1302_v2 = vmul.f32 %v3401_v29, %v1298_v49  ;;  %v1185_v43 = vadd.f32 1.0, %v2518_v32  ;;  %v1305_v39 = vadd.f32 %v1304_v33, %v1299_v31 }
 0x11a   : > { %v3587_v3 = vpop.eup %2523  ;;  %2549 = vrcp.f32 %v1140_v26  ;;  %v1344_v45 = vstv %s3563_s8  ;;  %v973_v6 = vadd.f32 %v969_v0, %v3531_v41  ;;  %v2069_v52 = vmul.f32 -1.442695, %v1260_v30  ;;  %s3723_s8 = sld [smem:[#allocation8 + $0x1b]] }
 0x11b   : > { %v3592_v48 = vpop.eup %2525  ;;  %2551 = vrcp.f32 %v1183_v1  ;;  %v1306_v9 = vadd.f32 %v1304_v33, %v1300_v23  ;;  %v1013_v58 = vmul.f32 %v3535_v40, %v3460_v25  ;;  %v2070_v61 = vmul.f32 -1.442695, %v1261_v28 }
 0x11c   : > { %v3595_v8 = vpop.eup %2527  ;;  %2553 = vpow2.f32 %v2068_v5  ;;  %v1307_v53 = vadd.f32 %v1304_v33, %v1301_v34  ;;  %v2071_v56 = vmul.f32 -1.442695, %v1262_v38  ;;  %v1308_v27 = vadd.f32 %v1304_v33, %v1302_v2 }
 0x11d   : > { %v3599_v47 = vpop.eup %2529  ;;  %2555 = vrcp.f32 %v1184_v36  ;;  %v1345_v59 = vmul.f32 %v3381_v10, %v1344_v45  ;;  %v2075_v0 = vmul.f32 -1.442695, %v1305_v39  ;;  %v1346_v37 = vmul.f32 %v3385_v15, %v1344_v45 }
 0x11e   : > { %v3602_v41 = vpop.eup %2531  ;;  %2557 = vrcp.f32 %v1185_v43  ;;  %v1350_v51 = vstv %s3577_s6  ;;  %v974_v11 = vadd.f32 %v3566_v16, %v3548_v54  ;;  %v1014_v7 = vmul.f32 %v3540_v44, %v3460_v25  ;;  %s3750_s6 = sld [smem:[#allocation7 + $0x1c]] }
 0x11f   : > { %v2534_v40 = vpop.eup %2533  ;;  %2559 = vpow2.f32 %v2069_v52  ;;  %v2076_v13 = vmul.f32 -1.442695, %v1306_v9  ;;  %v1015_v49 = vmul.f32 %v3543_v46, %v3460_v25  ;;  %v1017_v18 = vadd.f32 %v1013_v58, %v3560_v62 }
 0x120   : > { %v2536_v50 = vpop.eup %2535  ;;  %2561 = vpow2.f32 %v2070_v61  ;;  %v2077_v42 = vmul.f32 -1.442695, %v1307_v53  ;;  %v1016_v54 = vmul.f32 %v3546_v14, %v3460_v25  ;;  %v2078_v16 = vmul.f32 -1.442695, %v1308_v27 }
 0x121   : > { %v2538_v19 = vpop.eup %2537  ;;  %2563 = vpow2.f32 %v2071_v56  ;;  %v1351_v44 = vadd.f32 %v1350_v51, %v1345_v59  ;;  %v1347_v57 = vmul.f32 %v3395_v20, %v1344_v45  ;;  %v1352_v4 = vadd.f32 %v1350_v51, %v1346_v37 }
 0x122   : > { %v2540_v12 = vpop.eup %2539  ;;  %2565 = vpow2.f32 %v2075_v0  ;;  %v3621_v22 = vstv %s3590_s9  ;;  %v1018_v62 = vadd.f32 %v1014_v7, %v3573_v24  ;;  %v1186_v26 = vadd.f32 1.0, %v2534_v40  ;;  %s3771_s9 = sld [smem:[#allocation8 + $0x1c]] }
 0x123   : > { %v2542_v46 = vpop.eup %2541  ;;  %2567 = vpow2.f32 %v2076_v13  ;;  %v1348_v30 = vmul.f32 %v3401_v29, %v1344_v45  ;;  %v1019_v25 = vadd.f32 %v1015_v49, %v973_v6  ;;  %v1059_v14 = vmul.f32 %v3570_v60, %v3466_v63 }
 0x124   : > { %v3625_v31 = vpop.eup %2543  ;;  %v1229_v32 = vadd.f32 1.0, %v2536_v50  ;;  %2569 = vpow2.f32 %v2077_v42  ;;  %v1060_v24 = vmul.f32 %v3581_v21, %v3466_v63  ;;  %v2082_v23 = vmul.f32 -1.442695, %v1351_v44 }
 0x125   : > { %v3631_v1 = vpop.eup %2545  ;;  %2571 = vpow2.f32 %v2078_v16  ;;  %v1391_v33 = vmul.f32 %v3381_v10, %v3621_v22  ;;  %v1353_v60 = vadd.f32 %v1350_v51, %v1347_v57  ;;  %v2083_v5 = vmul.f32 -1.442695, %v1352_v4 }
 0x126   : > { %v3639_v28 = vpop.eup %2547  ;;  %v1392_v34 = vmul.f32 %v3385_v15, %v3621_v22  ;;  %v3644_v36 = vstv %s3606_s10  ;;  %v1061_v21 = vmul.f32 %v3584_v35, %v3466_v63  ;;  %2573 = vrcp.f32 %v1186_v26  ;;  %s3798_s10 = sld [smem:[#allocation8 + $0x1d]] }
 0x127   : > { %v3646_v38 = vpop.eup %2549  ;;  %v1230_v2 = vadd.f32 1.0, %v2538_v19  ;;  %v1354_v43 = vadd.f32 %v1350_v51, %v1348_v30  ;;  %v1020_v45 = vadd.f32 %v1016_v54, %v974_v11  ;;  %v3653_v6 = vstv %s3615_s17  ;;  %s3811_s17 = sld [smem:[#allocation7 + $0x1e]] }
 0x128   : > { %v3650_v39 = vpop.eup %2551  ;;  %v1231_v52 = vadd.f32 1.0, %v2540_v12  ;;  %2575 = vrcp.f32 %v1229_v32  ;;  %v1062_v58 = vmul.f32 %v3587_v3, %v3466_v63  ;;  %v1232_v61 = vadd.f32 1.0, %v2542_v46 }
 0x129   : > { %v2554_v9 = vpop.eup %2553  ;;  %2577 = vpow2.f32 %v2082_v23  ;;  %v1397_v53 = vadd.f32 %v3644_v36, %v1391_v33  ;;  %v1063_v56 = vadd.f32 %v1059_v14, %v1017_v18  ;;  %v2084_v27 = vmul.f32 -1.442695, %v1353_v60 }
 0x12a   : > { %v3660_v35 = vpop.eup %2555  ;;  %2579 = vpow2.f32 %v2083_v5  ;;  %v1398_v59 = vadd.f32 %v3644_v36, %v1392_v34  ;;  %v1064_v37 = vadd.f32 %v1060_v24, %v1018_v62  ;;  %v1065_v51 = vadd.f32 %v1061_v21, %v1019_v25 }
 0x12b   : > { %v3663_v0 = vpop.eup %2557  ;;  %2581 = vrcp.f32 %v1230_v2  ;;  %v2085_v63 = vmul.f32 -1.442695, %v1354_v43  ;;  %v1105_v40 = vmul.f32 %v3592_v48, %v3538_v17  ;;  %v3668_v11 = vstv %s3629_s30  ;;  %s3815_s30 = sld [smem:[#allocation10 + $0x18]] }
 0x12c   : > { %v2560_v3 = vpop.eup %2559  ;;  %2583 = vrcp.f32 %v1231_v52  ;;  %v1275_v7 = vadd.f32 1.0, %v2554_v9  ;;  %v1066_v50 = vadd.f32 %v1062_v58, %v1020_v45  ;;  %v2089_v49 = vmul.f32 -1.442695, %v1397_v53 }
 0x12d   : > { %v2562_v13 = vpop.eup %2561  ;;  %2585 = vrcp.f32 %v1232_v61  ;;  %v1436_v18 = vstv %s3637_s25  ;;  %v1106_v19 = vmul.f32 %v3595_v8, %v3538_v17  ;;  %v1393_v48 = vmul.f32 %v3395_v20, %v3621_v22  ;;  %s3817_s25 = sld [smem:[#allocation10 + $0x19]] }
 0x12e   : > { %v2564_v42 = vpop.eup %2563  ;;  %2587 = vpow2.f32 %v2084_v27  ;;  %v2090_v54 = vmul.f32 -1.442695, %v1398_v59  ;;  %v1107_v44 = vmul.f32 %v3599_v47, %v3538_v17  ;;  %v1276_v12 = vadd.f32 1.0, %v2560_v3 }
 0x12f   : > { %v2566_v16 = vpop.eup %2565  ;;  %2589 = vpow2.f32 %v2085_v63  ;;  %v1394_v57 = vmul.f32 %v3401_v29, %v3621_v22  ;;  %v3683_v46 = vadd.f32 %v1105_v40, %v1063_v56  ;;  %v1277_v8 = vadd.f32 1.0, %v2562_v13 }
 0x130   : > { %v2568_v4 = vpop.eup %2567  ;;  %2591 = vrcp.f32 %v1275_v7  ;;  %v1437_v62 = vmul.f32 %v3381_v10, %v1436_v18  ;;  %v1108_v30 = vmul.f32 %v3602_v41, %v3538_v17  ;;  %v1278_v25 = vadd.f32 1.0, %v2564_v42 }
 0x131   : > { %v2570_v26 = vpop.eup %2569  ;;  %2593 = vpow2.f32 %v2089_v49  ;;  %v1442_v14 = vstv %s3658_s11  ;;  %v3691_v32 = vadd.f32 %v1106_v19, %v1064_v37  ;;  %v1321_v22 = vadd.f32 1.0, %v2566_v16  ;;  %s3829_s11 = sld [smem:[#allocation10 + $0x1a]] }
 0x132   : > { %v2572_v47 = vpop.eup %2571  ;;  %v1399_v24 = vadd.f32 %v3644_v36, %v1393_v48  ;;  %2595 = vpow2.f32 %v2090_v54  ;;  %v1322_v23 = vadd.f32 1.0, %v2568_v4  ;;  %v1400_v17 = vadd.f32 %v3644_v36, %v1394_v57 }
 0x133   : > { %2597 = vrcp.f32 %v1276_v12  ;;  %v1438_v41 = vmul.f32 %v3385_v15, %v1436_v18  ;;  %v3700_v33 = vpop.eup %2573  ;;  %v1323_v60 = vadd.f32 1.0, %v2570_v26  ;;  %v1439_v5 = vmul.f32 %v3395_v20, %v1436_v18 }
 0x134   : > { %2599 = vrcp.f32 %v1277_v8  ;;  %v1443_v34 = vadd.f32 %v1442_v14, %v1437_v62  ;;  %v3705_v2 = vadd.f32 %v1107_v44, %v1065_v51  ;;  %v1324_v43 = vadd.f32 1.0, %v2572_v47 }
 0x135   : > { %v3703_v21 = vpop.eup %2575  ;;  %2601 = vrcp.f32 %v1278_v25  ;;  %v1482_v45 = vstv %s3671_s13  ;;  %v3710_v36 = vadd.f32 %v1108_v30, %v1066_v50  ;;  %v3713_v9 = vstv %s3675_s14  ;;  %s3835_s13 = sld [smem:[#allocation8 + $0x1e]] }
 0x136   : > { %v2578_v52 = vpop.eup %2577  ;;  %2603 = vrcp.f32 %v1321_v22  ;;  %v2091_v58 = vmul.f32 -1.442695, %v1399_v24  ;;  %v2092_v53 = vmul.f32 -1.442695, %v1400_v17  ;;  %v1440_v56 = vmul.f32 %v3401_v29, %v1436_v18  ;;  %v3756_v24 = vld [vmem:[%s3091_s18] sm:$0xff]  ;;  %s3867_s14 = sld [smem:[#allocation7 + $0x1f]] }
 0x137   : > { %v2580_v61 = vpop.eup %2579  ;;  %2605 = vrcp.f32 %v1322_v23  ;;  %v1444_v27 = vadd.f32 %v1442_v14, %v1438_v41  ;;  %v1445_v37 = vadd.f32 %v1442_v14, %v1439_v5  ;;  %v2096_v51 = vmul.f32 -1.442695, %v1443_v34  ;;  %v3762_v41 = vld [vmem:[%s3091_s18 + $0x8] sm:$0xff] }
 0x138   : > { %v3716_v59 = vpop.eup %2581  ;;  %2607 = vrcp.f32 %v1323_v60  ;;  %v1483_v63 = vmul.f32 %v3381_v10, %v1482_v45  ;;  %v1367_v40 = vadd.f32 1.0, %v2578_v52  ;;  %v1484_v7 = vmul.f32 %v3385_v15, %v1482_v45 }
 0x139   : > { %v3719_v3 = vpop.eup %2583  ;;  %2609 = vrcp.f32 %v1324_v43  ;;  %v1488_v13 = vstv %s3689_s15  ;;  %v1151_v29 = vmul.f32 %v3625_v31, %v3551_v55  ;;  %v3730_v49 = vstv %s3693_s24  ;;  %s3882_s15 = sld [smem:[#allocation8 + $0x1f]] }
 0x13a   : > { %v3725_v50 = vpop.eup %2585  ;;  %v1368_v18 = vadd.f32 1.0, %v2580_v61  ;;  %2611 = vpow2.f32 %v2091_v58  ;;  %v3733_v42 = vstv %s3696_s27  ;;  %v1446_v19 = vadd.f32 %v1442_v14, %v1440_v56  ;;  %s3918_s24 = sld [smem:[#allocation10 + $0x1b]] }
 0x13b   : > { %v2588_v10 = vpop.eup %2587  ;;  %2613 = vpow2.f32 %v2092_v53  ;;  %v2097_v48 = vmul.f32 -1.442695, %v1444_v27  ;;  %v1152_v54 = vmul.f32 %v3631_v1, %v3551_v55  ;;  %v2098_v16 = vmul.f32 -1.442695, %v1445_v37  ;;  %s3934_s27 = sld [smem:[#allocation10 + $0x1c]] }
 0x13c   : > { %v2590_v15 = vpop.eup %2589  ;;  %2615 = vpow2.f32 %v2096_v51  ;;  %v1489_v44 = vadd.f32 %v1488_v13, %v1483_v63  ;;  %v1485_v12 = vmul.f32 %v3395_v20, %v1482_v45  ;;  %v1490_v57 = vadd.f32 %v1488_v13, %v1484_v7  ;;  %v3747_v20 = vld [vmem:[%s3091_s18 + $0x18] sm:$0xff]  ;;  %v3783_v63 = vld [vmem:[%s3091_s18 + $0x10] sm:$0xff]  ;;  %s3794_s18 = sld [smem:[#allocation7 + $0x1d]] }
 0x13d   : > { %v3737_v31 = vpop.eup %2591  ;;  %2617 = vrcp.f32 %v1367_v40  ;;  %v1528_v4 = vstv %s3708_s7  ;;  %v1153_v62 = vmul.f32 %v3639_v28, %v3551_v55  ;;  %v1155_v26 = vadd.f32 %v1151_v29, %v3683_v46  ;;  %s3949_s7 = sld [smem:[#allocation10 + $0x1d]] }
 0x13e   : > { %v2594_v8 = vpop.eup %2593  ;;  %v1369_v30 = vadd.f32 1.0, %v2588_v10  ;;  %2619 = vrcp.f32 %v1368_v18  ;;  %v1154_v25 = vmul.f32 %v3646_v38, %v3551_v55  ;;  %v2099_v14 = vmul.f32 -1.442695, %v1446_v19 }
 0x13f   : > { %v2596_v1 = vpop.eup %2595  ;;  %2621 = vpow2.f32 %v2097_v48  ;;  %v1486_v47 = vmul.f32 %v3747_v20, %v1482_v45  ;;  %v1156_v28 = vadd.f32 %v1152_v54, %v3691_v32  ;;  %v2103_v46 = vmul.f32 -1.442695, %v1489_v44 }
 0x140   : > { %v3752_v22 = vpop.eup %2597  ;;  %2623 = vpow2.f32 %v2098_v16  ;;  %v1529_v23 = vmul.f32 %v3756_v24, %v1528_v4  ;;  %v1491_v38 = vadd.f32 %v1488_v13, %v1485_v12  ;;  %v2104_v17 = vmul.f32 -1.442695, %v1490_v57 }
 0x141   : > { %v3759_v55 = vpop.eup %2599  ;;  %v1530_v60 = vmul.f32 %v3762_v41, %v1528_v4  ;;  %v1534_v5 = vstv %s3723_s8  ;;  %v1157_v43 = vadd.f32 %v1153_v62, %v3705_v2  ;;  %v1197_v32 = vmul.f32 %v3650_v39, %v3653_v6  ;;  %s3956_s8 = sld [smem:[#allocation10 + $0x1e]] }
 0x142   : > { %v3766_v34 = vpop.eup %2601  ;;  %v1370_v45 = vadd.f32 1.0, %v2590_v15  ;;  %2625 = vrcp.f32 %v1369_v30  ;;  %v1158_v58 = vadd.f32 %v1154_v25, %v3710_v36  ;;  %v1413_v61 = vadd.f32 1.0, %v2594_v8 }
 0x143   : > { %v3773_v52 = vpop.eup %2603  ;;  %2627 = vpow2.f32 %v2099_v14  ;;  %v1492_v53 = vadd.f32 %v1488_v13, %v1486_v47  ;;  %v1198_v2 = vmul.f32 %v3660_v35, %v3653_v6  ;;  %v1414_v27 = vadd.f32 1.0, %v2596_v1 }
 0x144   : > { %v3776_v56 = vpop.eup %2605  ;;  %2629 = vpow2.f32 %v2103_v46  ;;  %v1535_v39 = vadd.f32 %v1534_v5, %v1529_v23  ;;  %v2105_v51 = vmul.f32 -1.442695, %v1491_v38  ;;  %v1531_v36 = vmul.f32 %v3783_v63, %v1528_v4 }
 0x145   : > { %v3780_v37 = vpop.eup %2607  ;;  %2631 = vpow2.f32 %v2104_v17  ;;  %v1536_v40 = vadd.f32 %v1534_v5, %v1530_v60  ;;  %v1199_v13 = vmul.f32 %v3663_v0, %v3653_v6  ;;  %v1201_v29 = vadd.f32 %v1197_v32, %v1155_v26 }
 0x146   : > { %v3786_v7 = vpop.eup %2609  ;;  %2633 = vrcp.f32 %v1370_v45  ;;  %v1532_v35 = vmul.f32 %v3747_v20, %v1528_v4  ;;  %v1200_v10 = vmul.f32 %v3700_v33, %v3653_v6  ;;  %v2106_v19 = vmul.f32 -1.442695, %v1492_v53 }
 0x147   : > { %v2612_v18 = vpop.eup %2611  ;;  %2635 = vrcp.f32 %v1413_v61  ;;  %v1574_v48 = vstv %s3750_s6  ;;  %v1202_v54 = vadd.f32 %v1198_v2, %v1156_v28  ;;  %v1243_v16 = vmul.f32 %v3703_v21, %v3668_v11  ;;  %s2142_s6 = sld [smem:[#allocation10 + $0x1f]] }
 0x148   : > { %v2614_v15 = vpop.eup %2613  ;;  %2637 = vrcp.f32 %v1414_v27  ;;  %v2110_v0 = vmul.f32 -1.442695, %v1535_v39  ;;  %v1537_v12 = vadd.f32 %v1534_v5, %v1531_v36  ;;  %v2111_v57 = vmul.f32 -1.442695, %v1536_v40 }
 0x149   : > { %v2616_v44 = vpop.eup %2615  ;;  %2639 = vpow2.f32 %v2105_v51  ;;  %v1575_v6 = vmul.f32 %v3756_v24, %v1574_v48  ;;  %v1415_v4 = vadd.f32 1.0, %v2612_v18  ;;  %v1538_v8 = vadd.f32 %v1534_v5, %v1532_v35 }
 0x14a   : > { %v3801_v33 = vpop.eup %2617  ;;  %v1576_v62 = vmul.f32 %v3762_v41, %v1574_v48  ;;  %v1580_v26 = vstv %s3771_s9  ;;  %v1203_v21 = vadd.f32 %v1199_v13, %v1157_v43  ;;  %v1204_v1 = vadd.f32 %v1200_v10, %v1158_v58  ;;  %s1757_s9 = sld [smem:[#allocation2]] }
 0x14b   : > { %v3805_v30 = vpop.eup %2619  ;;  %v1416_v25 = vadd.f32 1.0, %v2614_v15  ;;  %2641 = vpow2.f32 %v2106_v19  ;;  %v1244_v47 = vmul.f32 %v3716_v59, %v3668_v11  ;;  %v1245_v28 = vmul.f32 %v3719_v3, %v3668_v11 }
 0x14c   : > { %v2622_v14 = vpop.eup %2621  ;;  %v1459_v46 = vadd.f32 1.0, %v2616_v44  ;;  %2643 = vpow2.f32 %v2110_v0  ;;  %v3813_v38 = vadd.f32 %v1243_v16, %v1201_v29  ;;  %v2112_v17 = vmul.f32 -1.442695, %v1537_v12 }
 0x14d   : > { %v2624_v23 = vpop.eup %2623  ;;  %2645 = vpow2.f32 %v2111_v57  ;;  %v1581_v60 = vadd.f32 %v1580_v26, %v1575_v6  ;;  %v2113_v59 = vmul.f32 -1.442695, %v1538_v8  ;;  %v1577_v3 = vmul.f32 %v3783_v63, %v1574_v48 }
 0x14e   : > { %2647 = vrcp.f32 %v1415_v4  ;;  %v1582_v5 = vadd.f32 %v1580_v26, %v1576_v62  ;;  %v1246_v32 = vmul.f32 %v3725_v50, %v3668_v11  ;;  %v1460_v45 = vadd.f32 1.0, %v2622_v14 }
 0x14f   : > { %v3820_v43 = vpop.eup %2625  ;;  %2649 = vrcp.f32 %v1416_v25  ;;  %v1578_v58 = vmul.f32 %v3747_v20, %v1574_v48  ;;  %v1461_v53 = vadd.f32 1.0, %v2624_v23  ;;  %v1620_v2 = vstv %s3794_s18  ;;  %s280_s18 = scalar_lea.vmem [#allocation11], %s1917_s16 }
 0x150   : > { %v2628_v61 = vpop.eup %2627  ;;  %2651 = vrcp.f32 %v1459_v46  ;;  %v3827_v27 = vstv %s3798_s10  ;;  %v2117_v51 = vmul.f32 -1.442695, %v1581_v60  ;;  %v1621_v36 = vmul.f32 %v3756_v24, %v1620_v2  ;;  %s2153_s10 = sshll.u32 %s2973_s4, 9  ;;  %s2918_s4 = smov [#allocation11]  }
 0x151   : > { %v2630_v39 = vpop.eup %2629  ;;  %2653 = vpow2.f32 %v2112_v17  ;;  %v1622_v40 = vmul.f32 %v3762_v41, %v1620_v2  ;;  %v3833_v50 = vadd.f32 %v1244_v47, %v1202_v54  ;;  %v1583_v13 = vadd.f32 %v1580_v26, %v1577_v3 }
 0x152   : > { %v2632_v11 = vpop.eup %2631  ;;  %2655 = vpow2.f32 %v2113_v59  ;;  %v2118_v29 = vmul.f32 -1.442695, %v1582_v5  ;;  %v3839_v18 = vadd.f32 %v1245_v28, %v1203_v21  ;;  %v1462_v10 = vadd.f32 1.0, %v2628_v61 }
 0x153   : > { %v3837_v35 = vpop.eup %2633  ;;  %2657 = vrcp.f32 %v1460_v45  ;;  %v1627_v19 = vadd.f32 %v3827_v27, %v1621_v36  ;;  %v1505_v15 = vadd.f32 1.0, %v2630_v39  ;;  %v1584_v54 = vadd.f32 %v1580_v26, %v1578_v58 }
 0x154   : > { %v3842_v48 = vpop.eup %2635  ;;  %2659 = vrcp.f32 %v1461_v53  ;;  %v1666_v16 = vstv %s3811_s17  ;;  %v3847_v44 = vadd.f32 %v1246_v32, %v1204_v1  ;;  %v1506_v12 = vadd.f32 1.0, %v2632_v11  ;;  %s1806_s17 = sshll.u32 %s280_s18, 4  ;;  %s3976_s17 = int_to_ptr.vmem [resolvable:$true] %s1806_s17 }
 0x155   : > { %v3845_v0 = vpop.eup %2637  ;;  %2661 = vpow2.f32 %v2117_v51  ;;  %v1628_v57 = vadd.f32 %v3827_v27, %v1622_v40  ;;  %v3851_v4 = vstv %s3815_s30  ;;  %v3854_v8 = vstv %s3817_s25  ;;  %s2840_s16 = scalar_lea.vmem %s3976_s17, 512 }
 0x156   : > { %v2640_v6 = vpop.eup %2639  ;;  %2663 = vpow2.f32 %v2118_v29  ;;  %v2119_v62 = vmul.f32 -1.442695, %v1583_v13  ;;  %v2124_v21 = vmul.f32 -1.442695, %v1627_v19  ;;  %v1667_v26 = vmul.f32 %v3756_v24, %v1666_v16  ;;  %p2841_p8 = scmp.ne.s32.totalorder %s3976_s17, %s2840_s16 }
 0x157   : > { %2665 = vrcp.f32 %v1462_v10  ;;  %v1668_v1 = vmul.f32 %v3762_v41, %v1666_v16  ;;  %v1289_v14 = vmul.f32 %v3737_v31, %v3713_v9  ;;  %v2120_v47 = vmul.f32 -1.442695, %v1584_v54 }
 0x158   : > { %v2642_v25 = vpop.eup %2641  ;;  %2667 = vrcp.f32 %v1505_v15  ;;  %v1623_v28 = vmul.f32 %v3783_v63, %v1620_v2  ;;  %v3862_v23 = vstv %s3829_s11  ;;  %v1624_v17 = vmul.f32 %v3747_v20, %v1620_v2  ;;  %s3974_s11 = scalar_lea.hbm %s4022_s5, %s2153_s10  ;;  %p2842_p7 = pnand %p2841_p8, %p4040_p13 }
 0x159   : > { %v2644_v46 = vpop.eup %2643  ;;  %2669 = vrcp.f32 %v1506_v12  ;;  %v2125_v60 = vmul.f32 -1.442695, %v1628_v57  ;;  %v1507_v3 = vadd.f32 1.0, %v2640_v6  ;;  %v1669_v5 = vmul.f32 %v3783_v63, %v1666_v16 }
 0x15a   : > { %v2646_v59 = vpop.eup %2645  ;;  %2671 = vpow2.f32 %v2119_v62  ;;  %v1672_v32 = vstv %s3835_s13  ;;  %v1508_v45 = vadd.f32 1.0, %v2642_v25  ;;  %v1290_v2 = vmul.f32 %v3752_v22, %v3713_v9  ;;  %s1792_s13 = scalar_lea.sflag [#allocation5], %s3085_s12  ;;  %p2843_p10 = pneg %p2842_p7 }
 0x15b   : > { %v3869_v31 = vpop.eup %2647  ;;  %2673 = vpow2.f32 %v2124_v21  ;;  %v1673_v58 = vadd.f32 %v1672_v32, %v1667_v26  ;;  %v1674_v61 = vadd.f32 %v1672_v32, %v1668_v1  ;;  %v1629_v39 = vadd.f32 %v3827_v27, %v1623_v28 }
 0x15c   : > { %v3871_v53 = vpop.eup %2649  ;;  %2675 = vpow2.f32 %v2120_v47  ;;  %v1670_v51 = vmul.f32 %v3747_v20, %v1666_v16  ;;  %v1291_v40 = vmul.f32 %v3759_v55, %v3713_v9  ;;  %v1630_v11 = vadd.f32 %v3827_v27, %v1624_v17 }
 0x15d   : > { %v3877_v36 = vpop.eup %2651  ;;  %2677 = vpow2.f32 %v2125_v60  ;;  %v2131_v13 = vmul.f32 -1.442695, %v1673_v58  ;;  %v1551_v10 = vadd.f32 1.0, %v2644_v46  ;;  %v1675_v22 = vadd.f32 %v1672_v32, %v1669_v5 }
 0x15e   : > { %v2654_v29 = vpop.eup %2653  ;;  %2679 = vrcp.f32 %v1507_v3  ;;  %v2132_v19 = vmul.f32 -1.442695, %v1674_v61  ;;  %v1292_v54 = vmul.f32 %v3766_v34, %v3713_v9  ;;  %v1293_v16 = vadd.f32 %v1289_v14, %v3813_v38 }
 0x15f   : > { %v2656_v15 = vpop.eup %2655  ;;  %2681 = vrcp.f32 %v1508_v45  ;;  %v1552_v55 = vadd.f32 1.0, %v2646_v59  ;;  %v1335_v27 = vmul.f32 %v3773_v52, %v3730_v49  ;;  %v2126_v57 = vmul.f32 -1.442695, %v1629_v39 }
 0x160   : > { %v3887_v12 = vpop.eup %2657  ;;  %v1676_v6 = vadd.f32 %v1672_v32, %v1670_v51  ;;  %2683 = vpow2.f32 %v2131_v13  ;;  %v1294_v21 = vadd.f32 %v1290_v2, %v3833_v50  ;;  %v1295_v26 = vadd.f32 %v1291_v40, %v3839_v18 }
 0x161   : > { %v3891_v62 = vpop.eup %2659  ;;  %v2127_v9 = vmul.f32 -1.442695, %v1630_v11  ;;  %2685 = vpow2.f32 %v2132_v19  ;;  %v1336_v38 = vmul.f32 %v3776_v56, %v3730_v49  ;;  %v2133_v1 = vmul.f32 -1.442695, %v1675_v22 }
 0x162   : > { %v2662_v34 = vpop.eup %2661  ;;  %2687 = vrcp.f32 %v1551_v10  ;;  %v1712_v25 = vstv %s3867_s14  ;;  %v1337_v14 = vmul.f32 %v3780_v37, %v3730_v49  ;;  %v1553_v47 = vadd.f32 1.0, %v2654_v29  ;;  %s2844_s14 = sshll.u32 %s2918_s4, 4  ;;  %s2845_s14 = int_to_ptr.vmem [resolvable:$false] %s2844_s14 }
 0x163   : > { %v2664_v52 = vpop.eup %2663  ;;  %2689 = vrcp.f32 %v1552_v55  ;;  %v1713_v50 = vmul.f32 %v3756_v24, %v1712_v25  ;;  %v1339_v18 = vadd.f32 %v1335_v27, %v1293_v16  ;;  %v2134_v46 = vmul.f32 -1.442695, %v1676_v6  ;;  %p2847_p12 = scmp.lt.s32.totalorder %s3976_s17, %s2845_s14 }
 0x164   : > { %v3901_v28 = vpop.eup %2665  ;;  %2691 = vpow2.f32 %v2126_v57  ;;  %v1714_v17 = vmul.f32 %v3762_v41, %v1712_v25  ;;  %v1381_v60 = vmul.f32 %v3801_v33, %v3733_v42  ;;  %v1597_v59 = vadd.f32 1.0, %v2662_v34 }
 0x165   : > { %v3904_v56 = vpop.eup %2667  ;;  %2693 = vpow2.f32 %v2127_v9  ;;  %v1718_v3 = vstv %s3882_s15  ;;  %v1598_v5 = vadd.f32 1.0, %v2664_v52  ;;  %v1296_v58 = vadd.f32 %v1292_v54, %v3847_v44  ;;  %s2846_s15 = scalar_lea.vmem %s2845_s14, 1024 }
 0x166   : > { %v3909_v37 = vpop.eup %2669  ;;  %2695 = vpow2.f32 %v2133_v1  ;;  %v1719_v24 = vadd.f32 %v1718_v3, %v1713_v50  ;;  %v1720_v32 = vadd.f32 %v1718_v3, %v1714_v17  ;;  %v1340_v61 = vadd.f32 %v1336_v38, %v1294_v21  ;;  %p2848_p0 = scmp.lt.s32.totalorder %s2846_s15, %s2840_s16 }
 0x167   : > { %v2672_v45 = vpop.eup %2671  ;;  %v1382_v41 = vmul.f32 %v3805_v30, %v3733_v42  ;;  %2697 = vrcp.f32 %v1553_v47  ;;  %v1715_v33 = vmul.f32 %v3783_v63, %v1712_v25  ;;  %v1338_v11 = vmul.f32 %v3786_v7, %v3730_v49 }
 0x168   : > { %v2674_v2 = vpop.eup %2673  ;;  %2699 = vpow2.f32 %v2134_v46  ;;  %v2138_v39 = vmul.f32 -1.442695, %v1719_v24  ;;  %v2139_v51 = vmul.f32 -1.442695, %v1720_v32  ;;  %v1554_v13 = vadd.f32 1.0, %v2656_v15  ;;  %p2849_p3 = por %p2848_p0, %p2847_p12 }
 0x169   : > { %v2676_v40 = vpop.eup %2675  ;;  %2701 = vrcp.f32 %v1597_v59  ;;  %v1716_v29 = vmul.f32 %v3747_v20, %v1712_v25  ;;  %v1341_v10 = vadd.f32 %v1337_v14, %v1295_v26  ;;  %v1385_v22 = vadd.f32 %v1381_v60, %v1339_v18 }
 0x16a   : > { %v2678_v44 = vpop.eup %2677  ;;  %v1599_v30 = vadd.f32 1.0, %v2672_v45  ;;  %2703 = vrcp.f32 %v1598_v5  ;;  %v1386_v63 = vadd.f32 %v1382_v41, %v1340_v61  ;;  %v1427_v54 = vmul.f32 %v3842_v48, %v3851_v4  ;;  %p2850_p2 = pnand %p2849_p3, %p2843_p10 }
 0x16b   : > { %v3920_v19 = vpop.eup %2679  ;;  %v1643_v16 = vadd.f32 1.0, %v2674_v2  ;;  %2705 = vpow2.f32 %v2138_v39  ;;  %v1428_v20 = vmul.f32 %v3845_v0, %v3851_v4  ;;  %v1644_v7 = vadd.f32 1.0, %v2678_v44 }
 0x16c   : > { %v3924_v49 = vpop.eup %2681  ;;  %v1721_v15 = vadd.f32 %v1718_v3, %v1715_v33  ;;  %2707 = vpow2.f32 %v2139_v51  ;;  %v1383_v27 = vmul.f32 %v3820_v43, %v3733_v42  ;;  %v1600_v57 = vadd.f32 1.0, %v2676_v40 }
 0x16d   : > { %v2684_v55 = vpop.eup %2683  ;;  %2709 = vrcp.f32 %v1554_v13  ;;  %v1722_v6 = vadd.f32 %v1718_v3, %v1716_v29  ;;  %v1342_v26 = vadd.f32 %v1338_v11, %v1296_v58  ;;  %v1384_v48 = vmul.f32 %v3837_v35, %v3733_v42 }
 0x16e   : > { %v2686_v21 = vpop.eup %2685  ;;  %2711 = vrcp.f32 %v1599_v30  ;;  %v1689_v9 = vadd.f32 1.0, %v2684_v55  ;;  %v1431_v38 = vadd.f32 %v1427_v54, %v1385_v22  ;;  %v1473_v0 = vmul.f32 %v3877_v36, %v3854_v8 }
 0x16f   : > { %v2688_v34 = vpop.eup %2687  ;;  %2713 = vrcp.f32 %v1643_v16  ;;  %v1690_v43 = vadd.f32 1.0, %v2686_v21  ;;  %v1432_v25 = vadd.f32 %v1428_v20, %v1386_v63  ;;  %v1474_v52 = vmul.f32 %v3887_v12, %v3854_v8 }
 0x170   : > { %v2690_v1 = vpop.eup %2689  ;;  %2715 = vrcp.f32 %v1644_v7  ;;  %v2140_v14 = vmul.f32 -1.442695, %v1721_v15  ;;  %v1387_v35 = vadd.f32 %v1383_v27, %v1341_v10  ;;  %v2141_v47 = vmul.f32 -1.442695, %v1722_v6 }
 0x171   : > { %v2692_v42 = vpop.eup %2691  ;;  %2717 = vrcp.f32 %v1600_v57  ;;  %v1388_v18 = vadd.f32 %v1384_v48, %v1342_v26  ;;  %v1429_v36 = vmul.f32 %v3869_v31, %v3851_v4  ;;  %v3941_v46 = vstv %s3918_s24 }
 0x172   : > { %v2694_v50 = vpop.eup %2693  ;;  %2719 = vrcp.f32 %v1689_v9  ;;  %v1430_v60 = vmul.f32 %v3871_v53, %v3851_v4  ;;  %v1477_v59 = vadd.f32 %v1473_v0, %v1431_v38  ;;  %v1519_v12 = vmul.f32 %v3904_v56, %v3862_v23 }
 0x173   : > { %v2696_v17 = vpop.eup %2695  ;;  %2721 = vrcp.f32 %v1690_v43  ;;  %v1478_v5 = vadd.f32 %v1474_v52, %v1432_v25  ;;  %v1520_v24 = vmul.f32 %v3909_v37, %v3862_v23  ;;  %v1645_v32 = vadd.f32 1.0, %v2692_v42 }
 0x174   : > { %v2698_v3 = vpop.eup %2697  ;;  %2723 = vpow2.f32 %v2140_v14  ;;  %v1646_v45 = vadd.f32 1.0, %v2694_v50  ;;  %v1433_v4 = vadd.f32 %v1429_v36, %v1387_v35  ;;  %v1475_v53 = vmul.f32 %v3891_v62, %v3854_v8 }
 0x175   : > { %v2700_v31 = vpop.eup %2699  ;;  %2725 = vpow2.f32 %v2141_v47  ;;  %v1691_v56 = vadd.f32 1.0, %v2696_v17  ;;  %v1523_v41 = vadd.f32 %v1519_v12, %v1477_v59  ;;  %v1565_v2 = vmul.f32 %v2688_v34, %v3941_v46 }
 0x176   : > { %v2702_v58 = vpop.eup %2701  ;;  %v1610_v33 = vstv %s3934_s27  ;;  %v1434_v37 = vadd.f32 %v1430_v60, %v1388_v18  ;;  %v1524_v51 = vadd.f32 %v1520_v24, %v1478_v5  ;;  %v1566_v40 = vmul.f32 %v2690_v1, %v3941_v46 }
 0x177   : > { %v2704_v61 = vpop.eup %2703  ;;  %2727 = vrcp.f32 %v1645_v32  ;;  %v1476_v13 = vmul.f32 %v3901_v28, %v3854_v8  ;;  %v1692_v62 = vadd.f32 1.0, %v2700_v31  ;;  %v1479_v10 = vadd.f32 %v1475_v53, %v1433_v4 }
 0x178   : > { %v2706_v39 = vpop.eup %2705  ;;  %2729 = vrcp.f32 %v1646_v45  ;;  %v1521_v63 = vmul.f32 %v3920_v19, %v3862_v23  ;;  %v1569_v54 = vadd.f32 %v1565_v2, %v1523_v41  ;;  %v1611_v16 = vmul.f32 %v2702_v58, %v1610_v33 }
 0x179   : > { %v2708_v11 = vpop.eup %2707  ;;  %v1735_v29 = vadd.f32 1.0, %v2706_v39  ;;  %2731 = vrcp.f32 %v1691_v56  ;;  %v1570_v7 = vadd.f32 %v1566_v40, %v1524_v51  ;;  %v1612_v15 = vmul.f32 %v2704_v61, %v1610_v33 }
 0x17a   : > { %v2710_v44 = vpop.eup %2709  ;;  %v1736_v22 = vadd.f32 1.0, %v2708_v11  ;;  %v1656_v55 = vstv %s3949_s7  ;;  %v1480_v28 = vadd.f32 %v1476_v13, %v1434_v37  ;;  %v1522_v27 = vmul.f32 %v3924_v49, %v3862_v23 }
 0x17b   : > { %v2712_v30 = vpop.eup %2711  ;;  %2733 = vrcp.f32 %v1735_v29  ;;  %v1525_v21 = vadd.f32 %v1521_v63, %v1479_v10  ;;  %v1567_v19 = vmul.f32 %v2698_v3, %v3941_v46  ;;  %v1615_v26 = vadd.f32 %v1611_v16, %v1569_v54 }
 0x17c   : > { %v2714_v20 = vpop.eup %2713  ;;  %2735 = vrcp.f32 %v1736_v22  ;;  %v1616_v34 = vadd.f32 %v1612_v15, %v1570_v7  ;;  %v1702_v0 = vstv %s3956_s8  ;;  %v1526_v1 = vadd.f32 %v1522_v27, %v1480_v28 }
 0x17d   : > { %v2716_v8 = vpop.eup %2715  ;;  %2737 = vrcp.f32 %v1692_v62  ;;  %v1657_v48 = vmul.f32 %v2714_v20, %v1656_v55  ;;  %v1568_v25 = vmul.f32 %v2710_v44, %v3941_v46  ;;  %v1571_v23 = vadd.f32 %v1567_v19, %v1525_v21 }
 0x17e   : > { %v2718_v57 = vpop.eup %2717  ;;  %v1658_v38 = vmul.f32 %v2716_v8, %v1656_v55  ;;  %v1613_v47 = vmul.f32 %v2712_v30, %v1610_v33  ;;  %v1748_v12 = vstv %s2142_s6  ;;  %v1758_v41 = vstv %s1757_s9 }
 0x17f   : > { %v2720_v6 = vpop.eup %2719  ;;  %v1661_v49 = vadd.f32 %v1657_v48, %v1615_v26  ;;  %v1572_v17 = vadd.f32 %v1568_v25, %v1526_v1  ;;  %v1614_v60 = vmul.f32 %v2718_v57, %v1610_v33 }
 0x180   : > { %v2722_v9 = vpop.eup %2721  ;;  %v1703_v42 = vmul.f32 %v2720_v6, %v1702_v0  ;;  %v1662_v50 = vadd.f32 %v1658_v38, %v1616_v34  ;;  %v1617_v24 = vadd.f32 %v1613_v47, %v1571_v23 }
 0x181   : > { %v2724_v43 = vpop.eup %2723  ;;  %v1704_v18 = vmul.f32 %v2722_v9, %v1702_v0  ;;  %v1618_v58 = vadd.f32 %v1614_v60, %v1572_v17 }
 0x182   : > { %v2726_v52 = vpop.eup %2725  ;;  %v1737_v14 = vadd.f32 1.0, %v2724_v43  ;;  %v1707_v5 = vadd.f32 %v1703_v42, %v1661_v49 }
 0x183   : > { %v1738_v35 = vadd.f32 1.0, %v2726_v52  ;;  %v1708_v31 = vadd.f32 %v1704_v18, %v1662_v50 }
 0x184   : > { %2739 = vrcp.f32 %v1737_v14  ;;  %v2728_v36 = vpop.eup %2727 }
 0x185   : > { %2741 = vrcp.f32 %v1738_v35  ;;  %v2730_v59 = vpop.eup %2729  ;;  %v1659_v32 = vmul.f32 %v2728_v36, %v1656_v55 }
 0x186   : > { %v2732_v3 = vpop.eup %2731  ;;  %v1660_v4 = vmul.f32 %v2730_v59, %v1656_v55 }
 0x187   : > { %v1663_v39 = vadd.f32 %v1659_v32, %v1617_v24  ;;  %v1705_v37 = vmul.f32 %v2732_v3, %v1702_v0 }
 0x188   : > { %v2734_v46 = vpop.eup %2733  ;;  %v1664_v51 = vadd.f32 %v1660_v4, %v1618_v58 }
 0x189   : > { %v2736_v45 = vpop.eup %2735  ;;  %v1749_v53 = vmul.f32 %v2734_v46, %v1748_v12  ;;  %v1709_v29 = vadd.f32 %v1705_v37, %v1663_v39 }
 0x18a   : > { %v2738_v56 = vpop.eup %2737  ;;  %v1750_v61 = vmul.f32 %v2736_v45, %v1748_v12 }
 0x18b   : > { %v1753_v2 = vadd.f32 %v1749_v53, %v1707_v5  ;;  %v1706_v40 = vmul.f32 %v2738_v56, %v1702_v0 }
 0x18c   : > { %v1754_v33 = vadd.f32 %v1750_v61, %v1708_v31 }
 0x18d   : > { %v1759_v11 = vadd.f32 %v1758_v41, %v1753_v2  ;;  %v1710_v22 = vadd.f32 %v1706_v40, %v1664_v51 }
 0x18e   : > { %v1760_v13 = vadd.f32 %v1758_v41, %v1754_v33 }
 0x18f   : > { %v2143_v62 = vmul.f32 -1.442695, %v1759_v11 }
 0x190   : > { %v2144_v44 = vmul.f32 -1.442695, %v1760_v13 }
 0x191   : > { %v2740_v10 = vpop.eup %2739  ;;  %2743 = vpow2.f32 %v2143_v62 }
 0x192   : > { %v2742_v30 = vpop.eup %2741  ;;  %v1751_v63 = vmul.f32 %v2740_v10, %v1748_v12  ;;  %2745 = vpow2.f32 %v2144_v44 }
 0x193   : > { %v1752_v54 = vmul.f32 %v2742_v30, %v1748_v12 }
 0x194   : > { %v1755_v16 = vadd.f32 %v1751_v63, %v1709_v29 }
 0x195   : > { %v1756_v20 = vadd.f32 %v1752_v54, %v1710_v22 }
 0x196   : > { %v1761_v7 = vadd.f32 %v1758_v41, %v1755_v16 }
 0x197   : > { %v1762_v15 = vadd.f32 %v1758_v41, %v1756_v20 }
 0x198   : > { %v2145_v55 = vmul.f32 -1.442695, %v1761_v7 }
 0x199   : > { %v2146_v8 = vmul.f32 -1.442695, %v1762_v15 }
 0x19a   : > { %2747 = vpow2.f32 %v2145_v55 }
 0x19b   : > { %2749 = vpow2.f32 %v2146_v8 }
 0x19e   : > { %v2744_v28 = vpop.eup %2743 }
 0x19f   : > { %v2746_v27 = vpop.eup %2745  ;;  %v1775_v57 = vadd.f32 1.0, %v2744_v28 }
 0x1a0   : > { %v1776_v6 = vadd.f32 1.0, %v2746_v27 }
 0x1a1   : > { %2751 = vrcp.f32 %v1775_v57 }
 0x1a2   : > { %2753 = vrcp.f32 %v1776_v6 }
 0x1a7   : > { %v2748_v21 = vpop.eup %2747 }
 0x1a8   : > { %v2750_v19 = vpop.eup %2749  ;;  %v1777_v26 = vadd.f32 1.0, %v2748_v21 }
 0x1a9   : > { %v1778_v48 = vadd.f32 1.0, %v2750_v19 }
 0x1aa   : > { %2755 = vrcp.f32 %v1777_v26 }
 0x1ab   : > { %2757 = vrcp.f32 %v1778_v48 }
 0x1ae   : > { %v2752_v9 = vpop.eup %2751 }
 0x1af   : > { %v2754_v34 = vpop.eup %2753  ;;  %1787 = vst [vmem:[%s280_s18] sm:$0xff] %v2752_v9 }
 0x1b0   : > { %1788 = vst [vmem:[%s280_s18 + $0x8] sm:$0xff] %v2754_v34 }
 0x1b7   : > { %v2756_v38 = vpop.eup %2755 }
 0x1b8   : > { %v2758_v0 = vpop.eup %2757  ;;  %1789 = vst [vmem:[%s280_s18 + $0x10] sm:$0xff] %v2756_v38 }
 0x1b9   : > { %1790 = vst [vmem:[%s280_s18 + $0x18] sm:$0xff] %v2758_v0 }
 0x1ba   : > { %2853 = shalt.err (!%p2850_p2)
}
 0x1bb   : > { %s2854_s24 = scalar_lea.hbm %s3974_s11, 512  ;;  %s2858_s7 = scalar_lea.hbm %s4022_s5, 1024 }
 0x1bc   : > { %p2855_p5 = scmp.ne.s32.totalorder %s3974_s11, %s2854_s24  ;;  %p2859_p1 = scmp.lt.s32.totalorder %s3974_s11, %s4022_s5 }
 0x1bd   : > { %p2860_p4 = scmp.lt.s32.totalorder %s2858_s7, %s2854_s24 }
 0x1be   : > { %p2856_p9 = pnand %p2855_p5, %p4040_p13 }
 0x1bf   : > { %p2861_p6 = por %p2860_p4, %p2859_p1 }
 0x1c0   : > { %p2857_p11 = pneg %p2856_p9 }
 0x1c2   : > { %p2862_p8 = pnand %p2861_p6, %p2857_p11 }
 0x1c4   : > { %2865 = shalt.err (!%p2862_p8)
}
 0x1c5   : > { %2168 = dma.vmem_to_hbm [thread:$0]  (%p4040_p13), %s3976_s17, 512, %s3974_s11, %s1792_s13  }
 0x1c6 PF: > { %s1818_s9 = sand.u32 1, %s2900_s20   ;;  %p4041_p7 = scmp.ne.s32.totalorder %s4028_s26, 0 }
 0x1c7   : > { %p4042_p10 = scmp.ge.s32.totalorder %s2912_s23, 2  ;;  %s1819_s18 = scalar_lea.sflag [#allocation5], %s1818_s9 }
 0x1c9   : > { %p2185_p12 = pnand %p4042_p10, %p4041_p7 }
 0x1cb   : > { %p2186_p0 = pneg %p2185_p12 }
 0x1cd   : > { %2895 = dma.done.wait (%p2186_p0), %s1819_s18, 512  }
 0x1ce   : > { %2897 = vsyncadd (%p2186_p0), %s1819_s18, 4294966784  ;;  %p21_p3 = scmp.ge.s32.totalorder %s3039_s19, 4   ;;  %s4043_s20 = smov %s2904_s21 }
 0x1cf   : > { %s4044_s21 = smov %s2908_s22  ;;  %s4045_s22 = smov %s3049_s28 }
 0x1d0   : > { %s4046_s23 = smov %s3039_s19  ;;  %23 = sbr.rel (!%p21_p3) target bundleno = 9 (0x9), region = 98 }
 0x1d5   :  { %1824 = vsyncpa [#allocation4], 1 }
 0x1d6   :  { %1826 = vsyncpa [#allocation4 + $0x1], 1 }
 0x1d7   :  { %1827 = vsyncpa [#allocation5], 1 }
 0x1d8   :  { %1829 = vsyncpa [#allocation5 + $0x1], 1 }
 0x1d9   :  { %1830 = vsyncpa [#allocation6], 1 }
 0x1da   :  { %1832 = vsyncpa [#allocation6 + $0x1], 1 }
 0x1db   :  { %1833 = vsyncpa [#allocation9], 1 }

</bundles_post_ra>
